<compile_context>
chip_gen: v5e
topology: v5e:2x2
jax: 0.10.0
libtpu: 0.0.40
codegen_flags: <defaults>
</compile_context>

<pallas_src>
import functools
import math

import jax
import jax.numpy as jnp
from jax.experimental import pallas as pl
from jax.experimental.pallas import tpu as pltpu

COMPUTE_DTYPE = jnp.bfloat16   # MXU operand dtype; accumulation is always f32.
LN_EPS = 1e-5


# ----------------------------- small helpers -----------------------------

def _pick_tile(total, prefs):
    for t in prefs:
        if t <= total and total % t == 0:
            return t
    return total                      # full dim is always a legal block


def _const_spec(arr):
    zeros = (0,) * arr.ndim
    # TODO(synk): pipeline_mode=pl.Buffered(1) would drop the double-buffer copy of these
    # constant operands; omitted to stay on the maximally portable lowering path.
    return pl.BlockSpec(arr.shape, lambda *_: zeros)


def _fp32_layernorm(x_f32, gamma, beta, eps):
    mu = jnp.mean(x_f32, axis=-1, keepdims=True)
    var = jnp.mean(jnp.square(x_f32 - mu), axis=-1, keepdims=True)
    return (x_f32 - mu) * jax.lax.rsqrt(var + eps) * gamma + beta


# ----------------------------- parameter preparation (shared by kernel + reference) -----------------------------

def _prepare_attn_params(p, heads, compute_dtype):
    D, inner = p["wq"].shape
    Dk = p["wk"].shape[0]
    dh = inner // heads
    scale = dh ** -0.5

    def per_head(w, d_in):
        return w.reshape(d_in, heads, dh).transpose(1, 0, 2).astype(compute_dtype)

    return {
        "wq3": per_head(p["wq"] * scale, D),   # softmax scale folded into the q projection
        "wk3": per_head(p["wk"], Dk),
        "wv3": per_head(p["wv"], Dk),
        "wo3": p["wo"].reshape(heads, dh, D).astype(compute_dtype),
        "bo2": p["bo"].reshape(1, D).astype(jnp.float32),
    }


def _prepare_ffn_params(p, compute_dtype):
    D, two_f = p["w1"].shape
    ffd = two_f // 2
    d_out = p["w2"].shape[1]
    return {
        "wa": p["w1"][:, :ffd].astype(compute_dtype),   # value path of the GEGLU
        "wg": p["w1"][:, ffd:].astype(compute_dtype),   # gate path of the GEGLU
        "ba": p["b1"][:ffd].reshape(1, ffd).astype(jnp.float32),
        "bg": p["b1"][ffd:].reshape(1, ffd).astype(jnp.float32),
        "w2": p["w2"].astype(compute_dtype),
        "b2": p["b2"].reshape(1, d_out).astype(jnp.float32),
    }


# ----------------------------- attention kernel (flash-style, per-head grid axis) -----------------------------

def _flash_attn_kernel(xq_ref, kv_ref, wq_ref, wk_ref, wv_ref, wo_ref,
                       bo_ref, ng_ref, nb_ref, o_ref,
                       lnq_s, q_s, m_s, l_s, acc_s, oacc_s,
                       *, normalize_kv, eps):
    h = pl.program_id(2)
    ki = pl.program_id(3)
    last_h = pl.num_programs(2) - 1
    last_k = pl.num_programs(3) - 1
    cdt = lnq_s.dtype

    # Per-(b, q-tile) init: LayerNorm of the query tile; out accumulator = residual + out-proj bias.
    @pl.when((h == 0) & (ki == 0))
    def _():
        xq = xq_ref[0].astype(jnp.float32)
        lnq_s[...] = _fp32_layernorm(xq, ng_ref[...], nb_ref[...], eps).astype(cdt)
        oacc_s[...] = xq + bo_ref[...]

    # Per-(b, q-tile, head) init: project q for this head, reset online-softmax state.
    @pl.when(ki == 0)
    def _():
        q_s[...] = jnp.dot(lnq_s[...], wq_ref[0],
                           preferred_element_type=jnp.float32).astype(cdt)
        m_s[...] = jnp.full(m_s.shape, -jnp.inf, m_s.dtype)
        l_s[...] = jnp.zeros(l_s.shape, l_s.dtype)
        acc_s[...] = jnp.zeros(acc_s.shape, acc_s.dtype)

    # KV tile for this head (self-attention normalizes the KV source with the same LayerNorm;
    # cross-attention consumes the raw context).
    if normalize_kv:
        kv_c = _fp32_layernorm(kv_ref[0].astype(jnp.float32),
                               ng_ref[...], nb_ref[...], eps).astype(cdt)
    else:
        kv_c = kv_ref[0].astype(cdt)
    k = jnp.dot(kv_c, wk_ref[0], preferred_element_type=jnp.float32).astype(cdt)
    v = jnp.dot(kv_c, wv_ref[0], preferred_element_type=jnp.float32).astype(cdt)

    # Online softmax update (all statistics in f32).
    s = jax.lax.dot_general(q_s[...], k, (((1,), (1,)), ((), ())),
                            preferred_element_type=jnp.float32)          # (tq, tk)
    m_prev = m_s[...]
    m_new = jnp.maximum(m_prev, jnp.max(s, axis=-1, keepdims=True))
    alpha = jnp.exp(m_prev - m_new)
    p = jnp.exp(s - m_new)
    l_s[...] = alpha * l_s[...] + jnp.sum(p, axis=-1, keepdims=True)
    acc_s[...] = alpha * acc_s[...] + jnp.dot(p.astype(cdt), v,
                                              preferred_element_type=jnp.float32)
    m_s[...] = m_new

    # Per-head finalize: normalize and fold this head into the out-projection accumulator.
    @pl.when(ki == last_k)
    def _():
        o_h = (acc_s[...] / l_s[...]).astype(cdt)   # exact divide on a (tq, dh) slab — negligible
        oacc_s[...] += jnp.dot(o_h, wo_ref[0], preferred_element_type=jnp.float32)

    # Per-(b, q-tile) epilogue.
    @pl.when((h == last_h) & (ki == last_k))
    def _():
        o_ref[0] = oacc_s[...].astype(o_ref.dtype)


def flash_attention_block(x, kv, attn_params, norm_g, norm_b, *, heads,
                          normalize_kv, eps=LN_EPS, compute_dtype=COMPUTE_DTYPE):
    B, N, D = x.shape
    _, M, Dk = kv.shape
    prep = _prepare_attn_params(attn_params, heads, compute_dtype)
    dh = prep["wq3"].shape[-1]
    ng2 = norm_g.reshape(1, D).astype(jnp.float32)
    nb2 = norm_b.reshape(1, D).astype(jnp.float32)

    tq = _pick_tile(N, (256, 128, 64, 32, 16, 8))
    tk = _pick_tile(M, (512, 256, 128, 64, 32, 16, 8))
    grid = (B, N // tq, heads, M // tk)

    kernel = functools.partial(_flash_attn_kernel, normalize_kv=normalize_kv, eps=eps)
    return pl.pallas_call(
        kernel,
        out_shape=jax.ShapeDtypeStruct((B, N, D), x.dtype),
        grid=grid,
        in_specs=[
            pl.BlockSpec((1, tq, D), lambda b, qi, h, ki: (b, qi, 0)),     # query rows
            pl.BlockSpec((1, tk, Dk), lambda b, qi, h, ki: (b, ki, 0)),    # kv rows
            pl.BlockSpec((1, D, dh), lambda b, qi, h, ki: (h, 0, 0)),      # wq (per head, scaled)
            pl.BlockSpec((1, Dk, dh), lambda b, qi, h, ki: (h, 0, 0)),     # wk (per head)
            pl.BlockSpec((1, Dk, dh), lambda b, qi, h, ki: (h, 0, 0)),     # wv (per head)
            pl.BlockSpec((1, dh, D), lambda b, qi, h, ki: (h, 0, 0)),      # wo (per head)
            _const_spec(prep["bo2"]),
            _const_spec(ng2),
            _const_spec(nb2),
        ],
        out_specs=pl.BlockSpec((1, tq, D), lambda b, qi, h, ki: (b, qi, 0)),
        scratch_shapes=[
            pltpu.VMEM((tq, D), compute_dtype),    # LayerNorm'd query tile (shared by all heads)
            pltpu.VMEM((tq, dh), compute_dtype),   # current head's q
            pltpu.VMEM((tq, 1), jnp.float32),      # online-softmax running max
            pltpu.VMEM((tq, 1), jnp.float32),      # online-softmax running sum
            pltpu.VMEM((tq, dh), jnp.float32),     # unnormalized per-head output accumulator
            pltpu.VMEM((tq, D), jnp.float32),      # residual + bias + sum_h o_h @ wo_h
        ],
        compiler_params=pltpu.CompilerParams(
            dimension_semantics=("parallel", "parallel", "arbitrary", "arbitrary"),
            vmem_limit_bytes=32 * 1024 * 1024),
    )(x, kv, prep["wq3"], prep["wk3"], prep["wv3"], prep["wo3"], prep["bo2"], ng2, nb2)


# ----------------------------- GEGLU feed-forward kernel (hidden-dim tiled) -----------------------------

def _geglu_ffn_kernel(x_ref, wa_ref, wg_ref, ba_ref, bg_ref, w2_ref, b2_ref,
                      ng_ref, nb_ref, o_ref, ln_s, acc_s, *, eps):
    f = pl.program_id(1)
    last_f = pl.num_programs(1) - 1
    cdt = ln_s.dtype

    @pl.when(f == 0)
    def _():
        xf = x_ref[...].astype(jnp.float32)
        ln_s[...] = _fp32_layernorm(xf, ng_ref[...], nb_ref[...], eps).astype(cdt)
        acc_s[...] = xf + b2_ref[...]          # residual + second-projection bias

    ln = ln_s[...]
    a = jnp.dot(ln, wa_ref[...], preferred_element_type=jnp.float32) + ba_ref[...]
    g = jnp.dot(ln, wg_ref[...], preferred_element_type=jnp.float32) + bg_ref[...]
    # Exact-erf GELU to match torch.nn.functional.gelu's default.
    # TODO(synk): tanh-approximate GELU would use the otherwise-idle EUP slot on v6e/v7x.
    gelu = 0.5 * g * (1.0 + jax.lax.erf(g * (1.0 / math.sqrt(2.0))))
    geglu = (a * gelu).astype(cdt)
    acc_s[...] += jnp.dot(geglu, w2_ref[...], preferred_element_type=jnp.float32)

    @pl.when(f == last_f)
    def _():
        o_ref[...] = acc_s[...].astype(o_ref.dtype)


def geglu_ffn_block(x, ff_params, norm_g, norm_b, *, eps=LN_EPS, compute_dtype=COMPUTE_DTYPE):
    B, N, D = x.shape
    T = B * N
    prep = _prepare_ffn_params(ff_params, compute_dtype)
    ffd = prep["wa"].shape[1]
    ng2 = norm_g.reshape(1, D).astype(jnp.float32)
    nb2 = norm_b.reshape(1, D).astype(jnp.float32)

    tm = _pick_tile(T, (512, 256, 128, 64, 32, 16, 8))    # big token tiles: amortize step overhead
    tf = _pick_tile(ffd, (512, 256, 128))                 # hidden-dim tiles: bound resident weights
    grid = (T // tm, ffd // tf)

    x2 = x.reshape(T, D)
    kernel = functools.partial(_geglu_ffn_kernel, eps=eps)
    out = pl.pallas_call(
        kernel,
        out_shape=jax.ShapeDtypeStruct((T, D), x.dtype),
        grid=grid,
        in_specs=[
            pl.BlockSpec((tm, D), lambda t, f: (t, 0)),
            pl.BlockSpec((D, tf), lambda t, f: (0, f)),    # GEGLU value-path weight slice
            pl.BlockSpec((D, tf), lambda t, f: (0, f)),    # GEGLU gate-path weight slice
            pl.BlockSpec((1, tf), lambda t, f: (0, f)),
            pl.BlockSpec((1, tf), lambda t, f: (0, f)),
            pl.BlockSpec((tf, D), lambda t, f: (f, 0)),    # second-projection weight slice
            _const_spec(prep["b2"]),
            _const_spec(ng2),
            _const_spec(nb2),
        ],
        out_specs=pl.BlockSpec((tm, D), lambda t, f: (t, 0)),
        scratch_shapes=[
            pltpu.VMEM((tm, D), compute_dtype),   # LayerNorm'd token tile (reused across f)
            pltpu.VMEM((tm, D), jnp.float32),     # residual + b2 + sum_f partial products
        ],
        compiler_params=pltpu.CompilerParams(
            dimension_semantics=("parallel", "arbitrary"),
            vmem_limit_bytes=32 * 1024 * 1024),
    )(x2, prep["wa"], prep["wg"], prep["ba"], prep["bg"], prep["w2"], prep["b2"], ng2, nb2)
    return out.reshape(B, N, D)


# ----------------------------- full block forward -----------------------------

def basic_transformer_block_fwd(x, context, params, *, n_heads):
    # x = attn1(norm1(x)) + x          (self-attention: KV source is norm1(x))
    x = flash_attention_block(x, x, params["attn1"], params["norm1_g"], params["norm1_b"],
                              heads=n_heads, normalize_kv=True)
    # x = attn2(norm2(x), context) + x (cross-attention: context consumed raw)
    x = flash_attention_block(x, context, params["attn2"], params["norm2_g"], params["norm2_b"],
                              heads=n_heads, normalize_kv=False)
    # x = ff(norm3(x)) + x             (GEGLU feed-forward)
    x = geglu_ffn_block(x, params["ff"], params["norm3_g"], params["norm3_b"])
    return x


# ----------------------------- parameter init (weights stored (Din, Dout), f32) -----------------------------

def _xavier(key, d_in, d_out):
    bound = math.sqrt(6.0 / (d_in + d_out))
    return jax.random.uniform(key, (d_in, d_out), jnp.float32, -bound, bound)


def init_attn_params(key, query_dim, context_dim, heads, d_head):
    inner = heads * d_head
    kq, kk, kv, kw, kb = jax.random.split(key, 5)
    bb = 1.0 / math.sqrt(inner)
    return {
        "wq": _xavier(kq, query_dim, inner),
        "wk": _xavier(kk, context_dim, inner),
        "wv": _xavier(kv, context_dim, inner),
        "wo": _xavier(kw, inner, query_dim),
        "bo": jax.random.uniform(kb, (query_dim,), jnp.float32, -bb, bb),
    }


def init_ff_params(key, dim, mult=4):
    inner = dim * mult
    k1, kb1, k2, kb2 = jax.random.split(key, 4)
    return {
        "w1": _xavier(k1, dim, inner * 2),
        "b1": jax.random.uniform(kb1, (inner * 2,), jnp.float32,
                                 -1.0 / math.sqrt(dim), 1.0 / math.sqrt(dim)),
        "w2": _xavier(k2, inner, dim),
        "b2": jax.random.uniform(kb2, (dim,), jnp.float32,
                                 -1.0 / math.sqrt(inner), 1.0 / math.sqrt(inner)),
    }


def init_block_params(key, dim, heads, d_head, context_dim):
    ks = jax.random.split(key, 9)
    return {
        "attn1": init_attn_params(ks[0], dim, dim, heads, d_head),          # self-attention
        "attn2": init_attn_params(ks[1], dim, context_dim, heads, d_head),  # cross-attention
        "ff": init_ff_params(ks[2], dim),
        "norm1_g": 1.0 + 0.05 * jax.random.normal(ks[3], (dim,), jnp.float32),
        "norm1_b": 0.05 * jax.random.normal(ks[4], (dim,), jnp.float32),
        "norm2_g": 1.0 + 0.05 * jax.random.normal(ks[5], (dim,), jnp.float32),
        "norm2_b": 0.05 * jax.random.normal(ks[6], (dim,), jnp.float32),
        "norm3_g": 1.0 + 0.05 * jax.random.normal(ks[7], (dim,), jnp.float32),
        "norm3_b": 0.05 * jax.random.normal(ks[8], (dim,), jnp.float32),
    }


# ----------------------------- pure-JAX reference (mirrors the kernel's bf16 MXU policy) -----------------------------

def _ref_layernorm(x, g, b, eps):
    xf = x.astype(jnp.float32)
    mu = xf.mean(-1, keepdims=True)
    var = ((xf - mu) ** 2).mean(-1, keepdims=True)
    return (xf - mu) * jax.lax.rsqrt(var + eps) * g + b


def _ref_attention_block(x, kv, p, ng, nb, heads, normalize_kv,
                         eps=LN_EPS, cdt=COMPUTE_DTYPE):
    prep = _prepare_attn_params(p, heads, cdt)
    ngf, nbf = ng.astype(jnp.float32), nb.astype(jnp.float32)
    lnq = _ref_layernorm(x, ngf, nbf, eps).astype(cdt)
    kvc = _ref_layernorm(kv, ngf, nbf, eps).astype(cdt) if normalize_kv else kv.astype(cdt)
    q = jnp.einsum("bnd,hdk->bhnk", lnq, prep["wq3"], preferred_element_type=jnp.float32)
    k = jnp.einsum("bmc,hck->bhmk", kvc, prep["wk3"], preferred_element_type=jnp.float32)
    v = jnp.einsum("bmc,hck->bhmk", kvc, prep["wv3"], preferred_element_type=jnp.float32)
    s = jnp.einsum("bhnk,bhmk->bhnm", q.astype(cdt), k.astype(cdt),
                   preferred_element_type=jnp.float32)
    m = jnp.max(s, axis=-1, keepdims=True)
    p_un = jnp.exp(s - m)
    l = jnp.sum(p_un, axis=-1, keepdims=True)
    o = jnp.einsum("bhnm,bhmk->bhnk", p_un.astype(cdt), v.astype(cdt),
                   preferred_element_type=jnp.float32) / l
    y = jnp.einsum("bhnk,hkd->bnd", o.astype(cdt), prep["wo3"],
                   preferred_element_type=jnp.float32)
    return x.astype(jnp.float32) + prep["bo2"] + y


def _ref_ffn_block(x, p, ng, nb, eps=LN_EPS, cdt=COMPUTE_DTYPE):
    prep = _prepare_ffn_params(p, cdt)
    ln = _ref_layernorm(x, ng.astype(jnp.float32), nb.astype(jnp.float32), eps).astype(cdt)
    a = jnp.einsum("bnd,df->bnf", ln, prep["wa"], preferred_element_type=jnp.float32) + prep["ba"]
    g = jnp.einsum("bnd,df->bnf", ln, prep["wg"], preferred_element_type=jnp.float32) + prep["bg"]
    gelu = 0.5 * g * (1.0 + jax.lax.erf(g * (1.0 / math.sqrt(2.0))))
    gg = (a * gelu).astype(cdt)
    y = jnp.einsum("bnf,fd->bnd", gg, prep["w2"], preferred_element_type=jnp.float32) + prep["b2"]
    return x.astype(jnp.float32) + y


def ref_block(x, context, params, heads):
    x = _ref_attention_block(x, x, params["attn1"], params["norm1_g"], params["norm1_b"],
                             heads, True)
    x = _ref_attention_block(x, context, params["attn2"], params["norm2_g"], params["norm2_b"],
                             heads, False)
    x = _ref_ffn_block(x, params["ff"], params["norm3_g"], params["norm3_b"])
    return x


# ----------------------------- main -----------------------------

if __name__ == "__main__":
    B, N, M = 2, 8, 12
    dim, heads, d_head = 32, 4, 8          # inner_dim = 32, ff_inner = 128
    context_dim = 48

    key = jax.random.PRNGKey(0)
    kx, kc, kp = jax.random.split(key, 3)
    x = jax.random.normal(kx, (B, N, dim), jnp.float32)
    context = jax.random.normal(kc, (B, M, context_dim), jnp.float32)
    params = init_block_params(kp, dim, heads, d_head, context_dim)

    fwd = jax.jit(functools.partial(basic_transformer_block_fwd, n_heads=heads))
    out = jax.block_until_ready(fwd(x, context, params))

    ref = ref_block(x, context, params, heads)
    assert out.shape == (B, N, dim) and out.dtype == jnp.float32
    max_err = float(jnp.max(jnp.abs(out - ref)))
    # Tolerance covers bf16-operand MXU matmuls (f32 accumulation), the online-softmax vs
    # single-pass-softmax reassociation, and Mosaic-vs-XLA transcendental ULP differences.
    assert jnp.allclose(out, ref, atol=5e-3, rtol=5e-3), \
        f"Pallas output mismatch vs reference (max abs err = {max_err})"

    print("KERNEL_OK")
</pallas_src>

<mosaic_0001>
module attributes {stable_mosaic.version = 11 : i64} {
  func.func @_flash_attn_kernel(%arg0: i32, %arg1: i32, %arg2: i32, %arg3: i32, %arg4: memref<1x8x32xf32, #tpu.memory_space<vmem>>, %arg5: memref<1x8x32xf32, #tpu.memory_space<vmem>>, %arg6: memref<1x32x8xbf16, #tpu.memory_space<vmem>>, %arg7: memref<1x32x8xbf16, #tpu.memory_space<vmem>>, %arg8: memref<1x32x8xbf16, #tpu.memory_space<vmem>>, %arg9: memref<1x8x32xbf16, #tpu.memory_space<vmem>>, %arg10: memref<1x32xf32, #tpu.memory_space<vmem>>, %arg11: memref<1x32xf32, #tpu.memory_space<vmem>>, %arg12: memref<1x32xf32, #tpu.memory_space<vmem>>, %arg13: memref<1x8x32xf32, #tpu.memory_space<vmem>>, %arg14: memref<8x32xbf16, #tpu.memory_space<vmem>>, %arg15: memref<8x8xbf16, #tpu.memory_space<vmem>>, %arg16: memref<8x1xf32, #tpu.memory_space<vmem>>, %arg17: memref<8x1xf32, #tpu.memory_space<vmem>>, %arg18: memref<8x8xf32, #tpu.memory_space<vmem>>, %arg19: memref<8x32xf32, #tpu.memory_space<vmem>>) attributes {dimension_semantics = [#tpu.dimension_semantics<parallel>, #tpu.dimension_semantics<parallel>, #tpu.dimension_semantics<arbitrary>, #tpu.dimension_semantics<arbitrary>], iteration_bounds = array<i64: 2, 1, 4, 1>, scalar_prefetch = 0 : i64, scratch_operands = 6 : i64, tpu.core_type = #tpu.core_type<tc>, window_params = [{transform_indices = @transform_0, window_bounds = array<i64: 1, 8, 32>}, {transform_indices = @transform_1, window_bounds = array<i64: 1, 8, 32>}, {transform_indices = @transform_2, window_bounds = array<i64: 1, 32, 8>}, {transform_indices = @transform_3, window_bounds = array<i64: 1, 32, 8>}, {transform_indices = @transform_4, window_bounds = array<i64: 1, 32, 8>}, {transform_indices = @transform_5, window_bounds = array<i64: 1, 8, 32>}, {pipeline_mode = #tpu.pipeline_mode<synchronous>, transform_indices = @transform_6, window_bounds = array<i64: 1, 32>}, {pipeline_mode = #tpu.pipeline_mode<synchronous>, transform_indices = @transform_7, window_bounds = array<i64: 1, 32>}, {pipeline_mode = #tpu.pipeline_mode<synchronous>, transform_indices = @transform_8, window_bounds = array<i64: 1, 32>}, {transform_indices = @transform_9, window_bounds = array<i64: 1, 8, 32>}]} {
    %c0_i32 = arith.constant 0 : i32
    %0 = arith.cmpi eq, %arg2, %c0_i32 : i32
    %c0_i32_0 = arith.constant 0 : i32
    %1 = arith.cmpi eq, %arg3, %c0_i32_0 : i32
    %2 = arith.andi %0, %1 : i1
    %3 = arith.extui %2 : i1 to i32
    %c0_i32_1 = arith.constant 0 : i32
    %4 = arith.cmpi ne, %3, %c0_i32_1 : i32
    scf.if %4 {
      %c0_44 = arith.constant 0 : index
      %c0_45 = arith.constant 0 : index
      %c0_46 = arith.constant 0 : index
      %76 = vector.load %arg4[%c0_44, %c0_45, %c0_46] : memref<1x8x32xf32, #tpu.memory_space<vmem>>, vector<1x8x32xf32>
      %77 = vector.shape_cast %76 : vector<1x8x32xf32> to vector<8x32xf32>
      %c0_47 = arith.constant 0 : index
      %c0_48 = arith.constant 0 : index
      %78 = vector.load %arg11[%c0_47, %c0_48] : memref<1x32xf32, #tpu.memory_space<vmem>>, vector<1x32xf32>
      %c0_49 = arith.constant 0 : index
      %c0_50 = arith.constant 0 : index
      %79 = vector.load %arg12[%c0_49, %c0_50] : memref<1x32xf32, #tpu.memory_space<vmem>>, vector<1x32xf32>
      %cst_51 = arith.constant dense<0.000000e+00> : vector<8xf32>
      %80 = vector.multi_reduction <add>, %77, %cst_51 [1] : vector<8x32xf32> to vector<8xf32>
      %81 = vector.shape_cast %80 : vector<8xf32> to vector<8x1xf32>
      %cst_52 = arith.constant 3.200000e+01 : f32
      %82 = vector.broadcast %cst_52 : f32 to vector<8x1xf32>
      %83 = arith.divf %81, %82 : vector<8x1xf32>
      %84 = vector.broadcast %83 : vector<8x1xf32> to vector<8x32xf32>
      %85 = arith.subf %77, %84 : vector<8x32xf32>
      %86 = arith.mulf %85, %85 : vector<8x32xf32>
      %cst_53 = arith.constant dense<0.000000e+00> : vector<8xf32>
      %87 = vector.multi_reduction <add>, %86, %cst_53 [1] : vector<8x32xf32> to vector<8xf32>
      %88 = vector.shape_cast %87 : vector<8xf32> to vector<8x1xf32>
      %cst_54 = arith.constant 3.200000e+01 : f32
      %89 = vector.broadcast %cst_54 : f32 to vector<8x1xf32>
      %90 = arith.divf %88, %89 : vector<8x1xf32>
      %91 = vector.broadcast %83 : vector<8x1xf32> to vector<8x32xf32>
      %92 = arith.subf %77, %91 : vector<8x32xf32>
      %cst_55 = arith.constant 9.99999974E-6 : f32
      %93 = vector.broadcast %cst_55 : f32 to vector<8x1xf32>
      %94 = arith.addf %90, %93 : vector<8x1xf32>
      %95 = math.rsqrt %94 : vector<8x1xf32>
      %96 = vector.broadcast %95 : vector<8x1xf32> to vector<8x32xf32>
      %97 = arith.mulf %92, %96 : vector<8x32xf32>
      %98 = vector.broadcast %78 : vector<1x32xf32> to vector<8x32xf32>
      %99 = arith.mulf %97, %98 : vector<8x32xf32>
      %100 = vector.broadcast %79 : vector<1x32xf32> to vector<8x32xf32>
      %101 = arith.addf %99, %100 : vector<8x32xf32>
      %102 = arith.truncf %101 : vector<8x32xf32> to vector<8x32xbf16>
      %c0_56 = arith.constant 0 : index
      %c0_57 = arith.constant 0 : index
      %103 = vector.load %arg14[%c0_56, %c0_57] : memref<8x32xbf16, #tpu.memory_space<vmem>>, vector<8x32xbf16>
      tpu.vector_store %arg14[%c0_56, %c0_57], %102 {strides = array<i32>} : memref<8x32xbf16, #tpu.memory_space<vmem>>, vector<8x32xbf16>,
      %c0_58 = arith.constant 0 : index
      %c0_59 = arith.constant 0 : index
      %104 = vector.load %arg10[%c0_58, %c0_59] : memref<1x32xf32, #tpu.memory_space<vmem>>, vector<1x32xf32>
      %105 = vector.broadcast %104 : vector<1x32xf32> to vector<8x32xf32>
      %106 = arith.addf %77, %105 : vector<8x32xf32>
      %c0_60 = arith.constant 0 : index
      %c0_61 = arith.constant 0 : index
      %107 = vector.load %arg19[%c0_60, %c0_61] : memref<8x32xf32, #tpu.memory_space<vmem>>, vector<8x32xf32>
      tpu.vector_store %arg19[%c0_60, %c0_61], %106 {strides = array<i32>} : memref<8x32xf32, #tpu.memory_space<vmem>>, vector<8x32xf32>,
    } else {
    }
    %c0_i32_2 = arith.constant 0 : i32
    %5 = arith.cmpi eq, %arg3, %c0_i32_2 : i32
    %6 = arith.extui %5 : i1 to i32
    %c0_i32_3 = arith.constant 0 : i32
    %7 = arith.cmpi ne, %6, %c0_i32_3 : i32
    scf.if %7 {
      %c0_44 = arith.constant 0 : index
      %c0_45 = arith.constant 0 : index
      %76 = vector.load %arg14[%c0_44, %c0_45] : memref<8x32xbf16, #tpu.memory_space<vmem>>, vector<8x32xbf16>
      %c0_46 = arith.constant 0 : index
      %c0_47 = arith.constant 0 : index
      %c0_48 = arith.constant 0 : index
      %77 = vector.load %arg6[%c0_46, %c0_47, %c0_48] : memref<1x32x8xbf16, #tpu.memory_space<vmem>>, vector<1x32x8xbf16>
      %78 = vector.shape_cast %77 : vector<1x32x8xbf16> to vector<32x8xbf16>
      %cst_49 = arith.constant dense<0.000000e+00> : vector<8x8xf32>
      %79 = tpu.matmul %76, %78, %cst_49 {dimension_numbers = #tpu.dot_dimension_numbers<[1], [0], [0], [1], [0, 0, 1, 1], [], []>} : vector<8x32xbf16>, vector<32x8xbf16>, vector<8x8xf32> -> vector<8x8xf32>
      %80 = arith.truncf %79 : vector<8x8xf32> to vector<8x8xbf16>
      %c0_50 = arith.constant 0 : index
      %c0_51 = arith.constant 0 : index
      %81 = vector.load %arg15[%c0_50, %c0_51] : memref<8x8xbf16, #tpu.memory_space<vmem>>, vector<8x8xbf16>
      tpu.vector_store %arg15[%c0_50, %c0_51], %80 {strides = array<i32>} : memref<8x8xbf16, #tpu.memory_space<vmem>>, vector<8x8xbf16>,
      %cst_52 = arith.constant 0xFF800000 : f32
      %82 = vector.broadcast %cst_52 : f32 to vector<8x1xf32>
      %c0_53 = arith.constant 0 : index
      %c0_54 = arith.constant 0 : index
      %83 = vector.load %arg16[%c0_53, %c0_54] : memref<8x1xf32, #tpu.memory_space<vmem>>, vector<8x1xf32>
      tpu.vector_store %arg16[%c0_53, %c0_54], %82 {strides = array<i32>} : memref<8x1xf32, #tpu.memory_space<vmem>>, vector<8x1xf32>,
      %cst_55 = arith.constant 0.000000e+00 : f32
      %84 = vector.broadcast %cst_55 : f32 to vector<8x1xf32>
      %c0_56 = arith.constant 0 : index
      %c0_57 = arith.constant 0 : index
      %85 = vector.load %arg17[%c0_56, %c0_57] : memref<8x1xf32, #tpu.memory_space<vmem>>, vector<8x1xf32>
      tpu.vector_store %arg17[%c0_56, %c0_57], %84 {strides = array<i32>} : memref<8x1xf32, #tpu.memory_space<vmem>>, vector<8x1xf32>,
      %cst_58 = arith.constant 0.000000e+00 : f32
      %86 = vector.broadcast %cst_58 : f32 to vector<8x8xf32>
      %c0_59 = arith.constant 0 : index
      %c0_60 = arith.constant 0 : index
      %87 = vector.load %arg18[%c0_59, %c0_60] : memref<8x8xf32, #tpu.memory_space<vmem>>, vector<8x8xf32>
      tpu.vector_store %arg18[%c0_59, %c0_60], %86 {strides = array<i32>} : memref<8x8xf32, #tpu.memory_space<vmem>>, vector<8x8xf32>,
    } else {
    }
    %c0 = arith.constant 0 : index
    %c0_4 = arith.constant 0 : index
    %c0_5 = arith.constant 0 : index
    %8 = vector.load %arg5[%c0, %c0_4, %c0_5] : memref<1x8x32xf32, #tpu.memory_space<vmem>>, vector<1x8x32xf32>
    %9 = vector.shape_cast %8 : vector<1x8x32xf32> to vector<8x32xf32>
    %c0_6 = arith.constant 0 : index
    %c0_7 = arith.constant 0 : index
    %10 = vector.load %arg11[%c0_6, %c0_7] : memref<1x32xf32, #tpu.memory_space<vmem>>, vector<1x32xf32>
    %c0_8 = arith.constant 0 : index
    %c0_9 = arith.constant 0 : index
    %11 = vector.load %arg12[%c0_8, %c0_9] : memref<1x32xf32, #tpu.memory_space<vmem>>, vector<1x32xf32>
    %cst = arith.constant dense<0.000000e+00> : vector<8xf32>
    %12 = vector.multi_reduction <add>, %9, %cst [1] : vector<8x32xf32> to vector<8xf32>
    %13 = vector.shape_cast %12 : vector<8xf32> to vector<8x1xf32>
    %cst_10 = arith.constant 3.200000e+01 : f32
    %14 = vector.broadcast %cst_10 : f32 to vector<8x1xf32>
    %15 = arith.divf %13, %14 : vector<8x1xf32>
    %16 = vector.broadcast %15 : vector<8x1xf32> to vector<8x32xf32>
    %17 = arith.subf %9, %16 : vector<8x32xf32>
    %18 = arith.mulf %17, %17 : vector<8x32xf32>
    %cst_11 = arith.constant dense<0.000000e+00> : vector<8xf32>
    %19 = vector.multi_reduction <add>, %18, %cst_11 [1] : vector<8x32xf32> to vector<8xf32>
    %20 = vector.shape_cast %19 : vector<8xf32> to vector<8x1xf32>
    %cst_12 = arith.constant 3.200000e+01 : f32
    %21 = vector.broadcast %cst_12 : f32 to vector<8x1xf32>
    %22 = arith.divf %20, %21 : vector<8x1xf32>
    %23 = vector.broadcast %15 : vector<8x1xf32> to vector<8x32xf32>
    %24 = arith.subf %9, %23 : vector<8x32xf32>
    %cst_13 = arith.constant 9.99999974E-6 : f32
    %25 = vector.broadcast %cst_13 : f32 to vector<8x1xf32>
    %26 = arith.addf %22, %25 : vector<8x1xf32>
    %27 = math.rsqrt %26 : vector<8x1xf32>
    %28 = vector.broadcast %27 : vector<8x1xf32> to vector<8x32xf32>
    %29 = arith.mulf %24, %28 : vector<8x32xf32>
    %30 = vector.broadcast %10 : vector<1x32xf32> to vector<8x32xf32>
    %31 = arith.mulf %29, %30 : vector<8x32xf32>
    %32 = vector.broadcast %11 : vector<1x32xf32> to vector<8x32xf32>
    %33 = arith.addf %31, %32 : vector<8x32xf32>
    %34 = arith.truncf %33 : vector<8x32xf32> to vector<8x32xbf16>
    %c0_14 = arith.constant 0 : index
    %c0_15 = arith.constant 0 : index
    %c0_16 = arith.constant 0 : index
    %35 = vector.load %arg7[%c0_14, %c0_15, %c0_16] : memref<1x32x8xbf16, #tpu.memory_space<vmem>>, vector<1x32x8xbf16>
    %36 = vector.shape_cast %35 : vector<1x32x8xbf16> to vector<32x8xbf16>
    %cst_17 = arith.constant dense<0.000000e+00> : vector<8x8xf32>
    %37 = tpu.matmul %34, %36, %cst_17 {dimension_numbers = #tpu.dot_dimension_numbers<[1], [0], [0], [1], [0, 0, 1, 1], [], []>} : vector<8x32xbf16>, vector<32x8xbf16>, vector<8x8xf32> -> vector<8x8xf32>
    %38 = arith.truncf %37 : vector<8x8xf32> to vector<8x8xbf16>
    %c0_18 = arith.constant 0 : index
    %c0_19 = arith.constant 0 : index
    %c0_20 = arith.constant 0 : index
    %39 = vector.load %arg8[%c0_18, %c0_19, %c0_20] : memref<1x32x8xbf16, #tpu.memory_space<vmem>>, vector<1x32x8xbf16>
    %40 = vector.shape_cast %39 : vector<1x32x8xbf16> to vector<32x8xbf16>
    %cst_21 = arith.constant dense<0.000000e+00> : vector<8x8xf32>
    %41 = tpu.matmul %34, %40, %cst_21 {dimension_numbers = #tpu.dot_dimension_numbers<[1], [0], [0], [1], [0, 0, 1, 1], [], []>} : vector<8x32xbf16>, vector<32x8xbf16>, vector<8x8xf32> -> vector<8x8xf32>
    %42 = arith.truncf %41 : vector<8x8xf32> to vector<8x8xbf16>
    %c0_22 = arith.constant 0 : index
    %c0_23 = arith.constant 0 : index
    %43 = vector.load %arg15[%c0_22, %c0_23] : memref<8x8xbf16, #tpu.memory_space<vmem>>, vector<8x8xbf16>
    %cst_24 = arith.constant dense<0.000000e+00> : vector<8x8xf32>
    %44 = tpu.matmul %43, %38, %cst_24 {dimension_numbers = #tpu.dot_dimension_numbers<[1], [1], [0], [0], [0, 0, 1, 0], [], []>} : vector<8x8xbf16>, vector<8x8xbf16>, vector<8x8xf32> -> vector<8x8xf32>
    %c0_25 = arith.constant 0 : index
    %c0_26 = arith.constant 0 : index
    %45 = vector.load %arg16[%c0_25, %c0_26] : memref<8x1xf32, #tpu.memory_space<vmem>>, vector<8x1xf32>
    %cst_27 = arith.constant dense<0xFF800000> : vector<8xf32>
    %46 = vector.multi_reduction <maximumf>, %44, %cst_27 [1] : vector<8x8xf32> to vector<8xf32>
    %47 = vector.shape_cast %46 : vector<8xf32> to vector<8x1xf32>
    %48 = arith.maximumf %45, %47 : vector<8x1xf32>
    %49 = arith.subf %45, %48 : vector<8x1xf32>
    %50 = math.exp %49 : vector<8x1xf32>
    %51 = vector.broadcast %48 : vector<8x1xf32> to vector<8x8xf32>
    %52 = arith.subf %44, %51 : vector<8x8xf32>
    %53 = math.exp %52 : vector<8x8xf32>
    %c0_28 = arith.constant 0 : index
    %c0_29 = arith.constant 0 : index
    %54 = vector.load %arg17[%c0_28, %c0_29] : memref<8x1xf32, #tpu.memory_space<vmem>>, vector<8x1xf32>
    %55 = arith.mulf %50, %54 : vector<8x1xf32>
    %cst_30 = arith.constant dense<0.000000e+00> : vector<8xf32>
    %56 = vector.multi_reduction <add>, %53, %cst_30 [1] : vector<8x8xf32> to vector<8xf32>
    %57 = vector.shape_cast %56 : vector<8xf32> to vector<8x1xf32>
    %58 = arith.addf %55, %57 : vector<8x1xf32>
    %c0_31 = arith.constant 0 : index
    %c0_32 = arith.constant 0 : index
    %59 = vector.load %arg17[%c0_31, %c0_32] : memref<8x1xf32, #tpu.memory_space<vmem>>, vector<8x1xf32>
    tpu.vector_store %arg17[%c0_31, %c0_32], %58 {strides = array<i32>} : memref<8x1xf32, #tpu.memory_space<vmem>>, vector<8x1xf32>,
    %c0_33 = arith.constant 0 : index
    %c0_34 = arith.constant 0 : index
    %60 = vector.load %arg18[%c0_33, %c0_34] : memref<8x8xf32, #tpu.memory_space<vmem>>, vector<8x8xf32>
    %61 = vector.broadcast %50 : vector<8x1xf32> to vector<8x8xf32>
    %62 = arith.mulf %61, %60 : vector<8x8xf32>
    %63 = arith.truncf %53 : vector<8x8xf32> to vector<8x8xbf16>
    %cst_35 = arith.constant dense<0.000000e+00> : vector<8x8xf32>
    %64 = tpu.matmul %63, %42, %cst_35 {dimension_numbers = #tpu.dot_dimension_numbers<[1], [0], [0], [1], [0, 0, 1, 1], [], []>} : vector<8x8xbf16>, vector<8x8xbf16>, vector<8x8xf32> -> vector<8x8xf32>
    %65 = arith.addf %62, %64 : vector<8x8xf32>
    %c0_36 = arith.constant 0 : index
    %c0_37 = arith.constant 0 : index
    %66 = vector.load %arg18[%c0_36, %c0_37] : memref<8x8xf32, #tpu.memory_space<vmem>>, vector<8x8xf32>
    tpu.vector_store %arg18[%c0_36, %c0_37], %65 {strides = array<i32>} : memref<8x8xf32, #tpu.memory_space<vmem>>, vector<8x8xf32>,
    %c0_38 = arith.constant 0 : index
    %c0_39 = arith.constant 0 : index
    %67 = vector.load %arg16[%c0_38, %c0_39] : memref<8x1xf32, #tpu.memory_space<vmem>>, vector<8x1xf32>
    tpu.vector_store %arg16[%c0_38, %c0_39], %48 {strides = array<i32>} : memref<8x1xf32, #tpu.memory_space<vmem>>, vector<8x1xf32>,
    %c0_i32_40 = arith.constant 0 : i32
    %68 = arith.cmpi eq, %arg3, %c0_i32_40 : i32
    %69 = arith.extui %68 : i1 to i32
    %c0_i32_41 = arith.constant 0 : i32
    %70 = arith.cmpi ne, %69, %c0_i32_41 : i32
    scf.if %70 {
      %c0_44 = arith.constant 0 : index
      %c0_45 = arith.constant 0 : index
      %76 = vector.load %arg18[%c0_44, %c0_45] : memref<8x8xf32, #tpu.memory_space<vmem>>, vector<8x8xf32>
      %c0_46 = arith.constant 0 : index
      %c0_47 = arith.constant 0 : index
      %77 = vector.load %arg17[%c0_46, %c0_47] : memref<8x1xf32, #tpu.memory_space<vmem>>, vector<8x1xf32>
      %78 = vector.broadcast %77 : vector<8x1xf32> to vector<8x8xf32>
      %79 = arith.divf %76, %78 : vector<8x8xf32>
      %80 = arith.truncf %79 : vector<8x8xf32> to vector<8x8xbf16>
      %c0_48 = arith.constant 0 : index
      %c0_49 = arith.constant 0 : index
      %81 = vector.load %arg19[%c0_48, %c0_49] : memref<8x32xf32, #tpu.memory_space<vmem>>, vector<8x32xf32>
      %c0_50 = arith.constant 0 : index
      %c0_51 = arith.constant 0 : index
      %c0_52 = arith.constant 0 : index
      %82 = vector.load %arg9[%c0_50, %c0_51, %c0_52] : memref<1x8x32xbf16, #tpu.memory_space<vmem>>, vector<1x8x32xbf16>
      %83 = vector.shape_cast %82 : vector<1x8x32xbf16> to vector<8x32xbf16>
      %cst_53 = arith.constant dense<0.000000e+00> : vector<8x32xf32>
      %84 = tpu.matmul %80, %83, %cst_53 {dimension_numbers = #tpu.dot_dimension_numbers<[1], [0], [0], [1], [0, 0, 1, 1], [], []>} : vector<8x8xbf16>, vector<8x32xbf16>, vector<8x32xf32> -> vector<8x32xf32>
      %85 = arith.addf %81, %84 : vector<8x32xf32>
      %c0_54 = arith.constant 0 : index
      %c0_55 = arith.constant 0 : index
      %86 = vector.load %arg19[%c0_54, %c0_55] : memref<8x32xf32, #tpu.memory_space<vmem>>, vector<8x32xf32>
      tpu.vector_store %arg19[%c0_54, %c0_55], %85 {strides = array<i32>} : memref<8x32xf32, #tpu.memory_space<vmem>>, vector<8x32xf32>,
    } else {
    }
    %c3_i32 = arith.constant 3 : i32
    %71 = arith.cmpi eq, %arg2, %c3_i32 : i32
    %c0_i32_42 = arith.constant 0 : i32
    %72 = arith.cmpi eq, %arg3, %c0_i32_42 : i32
    %73 = arith.andi %71, %72 : i1
    %74 = arith.extui %73 : i1 to i32
    %c0_i32_43 = arith.constant 0 : i32
    %75 = arith.cmpi ne, %74, %c0_i32_43 : i32
    scf.if %75 {
      %c0_44 = arith.constant 0 : index
      %c0_45 = arith.constant 0 : index
      %76 = vector.load %arg19[%c0_44, %c0_45] : memref<8x32xf32, #tpu.memory_space<vmem>>, vector<8x32xf32>
      %c0_46 = arith.constant 0 : index
      %c0_47 = arith.constant 0 : index
      %c0_48 = arith.constant 0 : index
      %77 = vector.load %arg13[%c0_46, %c0_47, %c0_48] : memref<1x8x32xf32, #tpu.memory_space<vmem>>, vector<1x8x32xf32>
      %78 = vector.shape_cast %77 : vector<1x8x32xf32> to vector<8x32xf32>
      %79 = vector.shape_cast %76 : vector<8x32xf32> to vector<1x8x32xf32>
      tpu.vector_store %arg13[%c0_46, %c0_47, %c0_48], %79 {strides = array<i32>} : memref<1x8x32xf32, #tpu.memory_space<vmem>>, vector<1x8x32xf32>,
    } else {
    }
    return
  }
  func.func @transform_0(%arg0: i32, %arg1: i32, %arg2: i32, %arg3: i32) -> (i32, i32, i32) {
    %c0_i32 = arith.constant 0 : i32
    %c0_i32_0 = arith.constant 0 : i32
    return %arg0, %arg1, %c0_i32 : i32, i32, i32
  }
  func.func @transform_1(%arg0: i32, %arg1: i32, %arg2: i32, %arg3: i32) -> (i32, i32, i32) {
    %c0_i32 = arith.constant 0 : i32
    %c0_i32_0 = arith.constant 0 : i32
    return %arg0, %arg3, %c0_i32 : i32, i32, i32
  }
  func.func @transform_2(%arg0: i32, %arg1: i32, %arg2: i32, %arg3: i32) -> (i32, i32, i32) {
    %c0_i32 = arith.constant 0 : i32
    %c0_i32_0 = arith.constant 0 : i32
    %c0_i32_1 = arith.constant 0 : i32
    return %arg2, %c0_i32, %c0_i32_0 : i32, i32, i32
  }
  func.func @transform_3(%arg0: i32, %arg1: i32, %arg2: i32, %arg3: i32) -> (i32, i32, i32) {
    %c0_i32 = arith.constant 0 : i32
    %c0_i32_0 = arith.constant 0 : i32
    %c0_i32_1 = arith.constant 0 : i32
    return %arg2, %c0_i32, %c0_i32_0 : i32, i32, i32
  }
  func.func @transform_4(%arg0: i32, %arg1: i32, %arg2: i32, %arg3: i32) -> (i32, i32, i32) {
    %c0_i32 = arith.constant 0 : i32
    %c0_i32_0 = arith.constant 0 : i32
    %c0_i32_1 = arith.constant 0 : i32
    return %arg2, %c0_i32, %c0_i32_0 : i32, i32, i32
  }
  func.func @transform_5(%arg0: i32, %arg1: i32, %arg2: i32, %arg3: i32) -> (i32, i32, i32) {
    %c0_i32 = arith.constant 0 : i32
    %c0_i32_0 = arith.constant 0 : i32
    %c0_i32_1 = arith.constant 0 : i32
    return %arg2, %c0_i32, %c0_i32_0 : i32, i32, i32
  }
  func.func @transform_6(%arg0: i32, %arg1: i32, %arg2: i32, %arg3: i32) -> (i32, i32) {
    %c0_i32 = arith.constant 0 : i32
    %c0_i32_0 = arith.constant 0 : i32
    %c0_i32_1 = arith.constant 0 : i32
    return %c0_i32, %c0_i32_0 : i32, i32
  }
  func.func @transform_7(%arg0: i32, %arg1: i32, %arg2: i32, %arg3: i32) -> (i32, i32) {
    %c0_i32 = arith.constant 0 : i32
    %c0_i32_0 = arith.constant 0 : i32
    %c0_i32_1 = arith.constant 0 : i32
    return %c0_i32, %c0_i32_0 : i32, i32
  }
  func.func @transform_8(%arg0: i32, %arg1: i32, %arg2: i32, %arg3: i32) -> (i32, i32) {
    %c0_i32 = arith.constant 0 : i32
    %c0_i32_0 = arith.constant 0 : i32
    %c0_i32_1 = arith.constant 0 : i32
    return %c0_i32, %c0_i32_0 : i32, i32
  }
  func.func @transform_9(%arg0: i32, %arg1: i32, %arg2: i32, %arg3: i32) -> (i32, i32, i32) {
    %c0_i32 = arith.constant 0 : i32
    %c0_i32_0 = arith.constant 0 : i32
    return %arg0, %arg1, %c0_i32 : i32, i32, i32
  }
}

module attributes {stable_mosaic.version = 11 : i64} {
  func.func @_flash_attn_kernel(%arg0: i32, %arg1: i32, %arg2: i32, %arg3: i32, %arg4: memref<1x8x32xf32, #tpu.memory_space<vmem>>, %arg5: memref<1x12x48xf32, #tpu.memory_space<vmem>>, %arg6: memref<1x32x8xbf16, #tpu.memory_space<vmem>>, %arg7: memref<1x48x8xbf16, #tpu.memory_space<vmem>>, %arg8: memref<1x48x8xbf16, #tpu.memory_space<vmem>>, %arg9: memref<1x8x32xbf16, #tpu.memory_space<vmem>>, %arg10: memref<1x32xf32, #tpu.memory_space<vmem>>, %arg11: memref<1x32xf32, #tpu.memory_space<vmem>>, %arg12: memref<1x32xf32, #tpu.memory_space<vmem>>, %arg13: memref<1x8x32xf32, #tpu.memory_space<vmem>>, %arg14: memref<8x32xbf16, #tpu.memory_space<vmem>>, %arg15: memref<8x8xbf16, #tpu.memory_space<vmem>>, %arg16: memref<8x1xf32, #tpu.memory_space<vmem>>, %arg17: memref<8x1xf32, #tpu.memory_space<vmem>>, %arg18: memref<8x8xf32, #tpu.memory_space<vmem>>, %arg19: memref<8x32xf32, #tpu.memory_space<vmem>>) attributes {dimension_semantics = [#tpu.dimension_semantics<parallel>, #tpu.dimension_semantics<parallel>, #tpu.dimension_semantics<arbitrary>, #tpu.dimension_semantics<arbitrary>], iteration_bounds = array<i64: 2, 1, 4, 1>, scalar_prefetch = 0 : i64, scratch_operands = 6 : i64, tpu.core_type = #tpu.core_type<tc>, window_params = [{transform_indices = @transform_0, window_bounds = array<i64: 1, 8, 32>}, {transform_indices = @transform_1, window_bounds = array<i64: 1, 12, 48>}, {transform_indices = @transform_2, window_bounds = array<i64: 1, 32, 8>}, {transform_indices = @transform_3, window_bounds = array<i64: 1, 48, 8>}, {transform_indices = @transform_4, window_bounds = array<i64: 1, 48, 8>}, {transform_indices = @transform_5, window_bounds = array<i64: 1, 8, 32>}, {pipeline_mode = #tpu.pipeline_mode<synchronous>, transform_indices = @transform_6, window_bounds = array<i64: 1, 32>}, {pipeline_mode = #tpu.pipeline_mode<synchronous>, transform_indices = @transform_7, window_bounds = array<i64: 1, 32>}, {pipeline_mode = #tpu.pipeline_mode<synchronous>, transform_indices = @transform_8, window_bounds = array<i64: 1, 32>}, {transform_indices = @transform_9, window_bounds = array<i64: 1, 8, 32>}]} {
    %c0_i32 = arith.constant 0 : i32
    %0 = arith.cmpi eq, %arg2, %c0_i32 : i32
    %c0_i32_0 = arith.constant 0 : i32
    %1 = arith.cmpi eq, %arg3, %c0_i32_0 : i32
    %2 = arith.andi %0, %1 : i1
    %3 = arith.extui %2 : i1 to i32
    %c0_i32_1 = arith.constant 0 : i32
    %4 = arith.cmpi ne, %3, %c0_i32_1 : i32
    scf.if %4 {
      %c0_35 = arith.constant 0 : index
      %c0_36 = arith.constant 0 : index
      %c0_37 = arith.constant 0 : index
      %52 = vector.load %arg4[%c0_35, %c0_36, %c0_37] : memref<1x8x32xf32, #tpu.memory_space<vmem>>, vector<1x8x32xf32>
      %53 = vector.shape_cast %52 : vector<1x8x32xf32> to vector<8x32xf32>
      %c0_38 = arith.constant 0 : index
      %c0_39 = arith.constant 0 : index
      %54 = vector.load %arg11[%c0_38, %c0_39] : memref<1x32xf32, #tpu.memory_space<vmem>>, vector<1x32xf32>
      %c0_40 = arith.constant 0 : index
      %c0_41 = arith.constant 0 : index
      %55 = vector.load %arg12[%c0_40, %c0_41] : memref<1x32xf32, #tpu.memory_space<vmem>>, vector<1x32xf32>
      %cst_42 = arith.constant dense<0.000000e+00> : vector<8xf32>
      %56 = vector.multi_reduction <add>, %53, %cst_42 [1] : vector<8x32xf32> to vector<8xf32>
      %57 = vector.shape_cast %56 : vector<8xf32> to vector<8x1xf32>
      %cst_43 = arith.constant 3.200000e+01 : f32
      %58 = vector.broadcast %cst_43 : f32 to vector<8x1xf32>
      %59 = arith.divf %57, %58 : vector<8x1xf32>
      %60 = vector.broadcast %59 : vector<8x1xf32> to vector<8x32xf32>
      %61 = arith.subf %53, %60 : vector<8x32xf32>
      %62 = arith.mulf %61, %61 : vector<8x32xf32>
      %cst_44 = arith.constant dense<0.000000e+00> : vector<8xf32>
      %63 = vector.multi_reduction <add>, %62, %cst_44 [1] : vector<8x32xf32> to vector<8xf32>
      %64 = vector.shape_cast %63 : vector<8xf32> to vector<8x1xf32>
      %cst_45 = arith.constant 3.200000e+01 : f32
      %65 = vector.broadcast %cst_45 : f32 to vector<8x1xf32>
      %66 = arith.divf %64, %65 : vector<8x1xf32>
      %67 = vector.broadcast %59 : vector<8x1xf32> to vector<8x32xf32>
      %68 = arith.subf %53, %67 : vector<8x32xf32>
      %cst_46 = arith.constant 9.99999974E-6 : f32
      %69 = vector.broadcast %cst_46 : f32 to vector<8x1xf32>
      %70 = arith.addf %66, %69 : vector<8x1xf32>
      %71 = math.rsqrt %70 : vector<8x1xf32>
      %72 = vector.broadcast %71 : vector<8x1xf32> to vector<8x32xf32>
      %73 = arith.mulf %68, %72 : vector<8x32xf32>
      %74 = vector.broadcast %54 : vector<1x32xf32> to vector<8x32xf32>
      %75 = arith.mulf %73, %74 : vector<8x32xf32>
      %76 = vector.broadcast %55 : vector<1x32xf32> to vector<8x32xf32>
      %77 = arith.addf %75, %76 : vector<8x32xf32>
      %78 = arith.truncf %77 : vector<8x32xf32> to vector<8x32xbf16>
      %c0_47 = arith.constant 0 : index
      %c0_48 = arith.constant 0 : index
      %79 = vector.load %arg14[%c0_47, %c0_48] : memref<8x32xbf16, #tpu.memory_space<vmem>>, vector<8x32xbf16>
      tpu.vector_store %arg14[%c0_47, %c0_48], %78 {strides = array<i32>} : memref<8x32xbf16, #tpu.memory_space<vmem>>, vector<8x32xbf16>,
      %c0_49 = arith.constant 0 : index
      %c0_50 = arith.constant 0 : index
      %80 = vector.load %arg10[%c0_49, %c0_50] : memref<1x32xf32, #tpu.memory_space<vmem>>, vector<1x32xf32>
      %81 = vector.broadcast %80 : vector<1x32xf32> to vector<8x32xf32>
      %82 = arith.addf %53, %81 : vector<8x32xf32>
      %c0_51 = arith.constant 0 : index
      %c0_52 = arith.constant 0 : index
      %83 = vector.load %arg19[%c0_51, %c0_52] : memref<8x32xf32, #tpu.memory_space<vmem>>, vector<8x32xf32>
      tpu.vector_store %arg19[%c0_51, %c0_52], %82 {strides = array<i32>} : memref<8x32xf32, #tpu.memory_space<vmem>>, vector<8x32xf32>,
    } else {
    }
    %c0_i32_2 = arith.constant 0 : i32
    %5 = arith.cmpi eq, %arg3, %c0_i32_2 : i32
    %6 = arith.extui %5 : i1 to i32
    %c0_i32_3 = arith.constant 0 : i32
    %7 = arith.cmpi ne, %6, %c0_i32_3 : i32
    scf.if %7 {
      %c0_35 = arith.constant 0 : index
      %c0_36 = arith.constant 0 : index
      %52 = vector.load %arg14[%c0_35, %c0_36] : memref<8x32xbf16, #tpu.memory_space<vmem>>, vector<8x32xbf16>
      %c0_37 = arith.constant 0 : index
      %c0_38 = arith.constant 0 : index
      %c0_39 = arith.constant 0 : index
      %53 = vector.load %arg6[%c0_37, %c0_38, %c0_39] : memref<1x32x8xbf16, #tpu.memory_space<vmem>>, vector<1x32x8xbf16>
      %54 = vector.shape_cast %53 : vector<1x32x8xbf16> to vector<32x8xbf16>
      %cst_40 = arith.constant dense<0.000000e+00> : vector<8x8xf32>
      %55 = tpu.matmul %52, %54, %cst_40 {dimension_numbers = #tpu.dot_dimension_numbers<[1], [0], [0], [1], [0, 0, 1, 1], [], []>} : vector<8x32xbf16>, vector<32x8xbf16>, vector<8x8xf32> -> vector<8x8xf32>
      %56 = arith.truncf %55 : vector<8x8xf32> to vector<8x8xbf16>
      %c0_41 = arith.constant 0 : index
      %c0_42 = arith.constant 0 : index
      %57 = vector.load %arg15[%c0_41, %c0_42] : memref<8x8xbf16, #tpu.memory_space<vmem>>, vector<8x8xbf16>
      tpu.vector_store %arg15[%c0_41, %c0_42], %56 {strides = array<i32>} : memref<8x8xbf16, #tpu.memory_space<vmem>>, vector<8x8xbf16>,
      %cst_43 = arith.constant 0xFF800000 : f32
      %58 = vector.broadcast %cst_43 : f32 to vector<8x1xf32>
      %c0_44 = arith.constant 0 : index
      %c0_45 = arith.constant 0 : index
      %59 = vector.load %arg16[%c0_44, %c0_45] : memref<8x1xf32, #tpu.memory_space<vmem>>, vector<8x1xf32>
      tpu.vector_store %arg16[%c0_44, %c0_45], %58 {strides = array<i32>} : memref<8x1xf32, #tpu.memory_space<vmem>>, vector<8x1xf32>,
      %cst_46 = arith.constant 0.000000e+00 : f32
      %60 = vector.broadcast %cst_46 : f32 to vector<8x1xf32>
      %c0_47 = arith.constant 0 : index
      %c0_48 = arith.constant 0 : index
      %61 = vector.load %arg17[%c0_47, %c0_48] : memref<8x1xf32, #tpu.memory_space<vmem>>, vector<8x1xf32>
      tpu.vector_store %arg17[%c0_47, %c0_48], %60 {strides = array<i32>} : memref<8x1xf32, #tpu.memory_space<vmem>>, vector<8x1xf32>,
      %cst_49 = arith.constant 0.000000e+00 : f32
      %62 = vector.broadcast %cst_49 : f32 to vector<8x8xf32>
      %c0_50 = arith.constant 0 : index
      %c0_51 = arith.constant 0 : index
      %63 = vector.load %arg18[%c0_50, %c0_51] : memref<8x8xf32, #tpu.memory_space<vmem>>, vector<8x8xf32>
      tpu.vector_store %arg18[%c0_50, %c0_51], %62 {strides = array<i32>} : memref<8x8xf32, #tpu.memory_space<vmem>>, vector<8x8xf32>,
    } else {
    }
    %c0 = arith.constant 0 : index
    %c0_4 = arith.constant 0 : index
    %c0_5 = arith.constant 0 : index
    %8 = vector.load %arg5[%c0, %c0_4, %c0_5] : memref<1x12x48xf32, #tpu.memory_space<vmem>>, vector<1x12x48xf32>
    %9 = vector.shape_cast %8 : vector<1x12x48xf32> to vector<12x48xf32>
    %10 = arith.truncf %9 : vector<12x48xf32> to vector<12x48xbf16>
    %c0_6 = arith.constant 0 : index
    %c0_7 = arith.constant 0 : index
    %c0_8 = arith.constant 0 : index
    %11 = vector.load %arg7[%c0_6, %c0_7, %c0_8] : memref<1x48x8xbf16, #tpu.memory_space<vmem>>, vector<1x48x8xbf16>
    %12 = vector.shape_cast %11 : vector<1x48x8xbf16> to vector<48x8xbf16>
    %cst = arith.constant dense<0.000000e+00> : vector<12x8xf32>
    %13 = tpu.matmul %10, %12, %cst {dimension_numbers = #tpu.dot_dimension_numbers<[1], [0], [0], [1], [0, 0, 1, 1], [], []>} : vector<12x48xbf16>, vector<48x8xbf16>, vector<12x8xf32> -> vector<12x8xf32>
    %14 = arith.truncf %13 : vector<12x8xf32> to vector<12x8xbf16>
    %c0_9 = arith.constant 0 : index
    %c0_10 = arith.constant 0 : index
    %c0_11 = arith.constant 0 : index
    %15 = vector.load %arg8[%c0_9, %c0_10, %c0_11] : memref<1x48x8xbf16, #tpu.memory_space<vmem>>, vector<1x48x8xbf16>
    %16 = vector.shape_cast %15 : vector<1x48x8xbf16> to vector<48x8xbf16>
    %cst_12 = arith.constant dense<0.000000e+00> : vector<12x8xf32>
    %17 = tpu.matmul %10, %16, %cst_12 {dimension_numbers = #tpu.dot_dimension_numbers<[1], [0], [0], [1], [0, 0, 1, 1], [], []>} : vector<12x48xbf16>, vector<48x8xbf16>, vector<12x8xf32> -> vector<12x8xf32>
    %18 = arith.truncf %17 : vector<12x8xf32> to vector<12x8xbf16>
    %c0_13 = arith.constant 0 : index
    %c0_14 = arith.constant 0 : index
    %19 = vector.load %arg15[%c0_13, %c0_14] : memref<8x8xbf16, #tpu.memory_space<vmem>>, vector<8x8xbf16>
    %cst_15 = arith.constant dense<0.000000e+00> : vector<8x12xf32>
    %20 = tpu.matmul %19, %14, %cst_15 {dimension_numbers = #tpu.dot_dimension_numbers<[1], [1], [0], [0], [0, 0, 1, 0], [], []>} : vector<8x8xbf16>, vector<12x8xbf16>, vector<8x12xf32> -> vector<8x12xf32>
    %c0_16 = arith.constant 0 : index
    %c0_17 = arith.constant 0 : index
    %21 = vector.load %arg16[%c0_16, %c0_17] : memref<8x1xf32, #tpu.memory_space<vmem>>, vector<8x1xf32>
    %cst_18 = arith.constant dense<0xFF800000> : vector<8xf32>
    %22 = vector.multi_reduction <maximumf>, %20, %cst_18 [1] : vector<8x12xf32> to vector<8xf32>
    %23 = vector.shape_cast %22 : vector<8xf32> to vector<8x1xf32>
    %24 = arith.maximumf %21, %23 : vector<8x1xf32>
    %25 = arith.subf %21, %24 : vector<8x1xf32>
    %26 = math.exp %25 : vector<8x1xf32>
    %27 = vector.broadcast %24 : vector<8x1xf32> to vector<8x12xf32>
    %28 = arith.subf %20, %27 : vector<8x12xf32>
    %29 = math.exp %28 : vector<8x12xf32>
    %c0_19 = arith.constant 0 : index
    %c0_20 = arith.constant 0 : index
    %30 = vector.load %arg17[%c0_19, %c0_20] : memref<8x1xf32, #tpu.memory_space<vmem>>, vector<8x1xf32>
    %31 = arith.mulf %26, %30 : vector<8x1xf32>
    %cst_21 = arith.constant dense<0.000000e+00> : vector<8xf32>
    %32 = vector.multi_reduction <add>, %29, %cst_21 [1] : vector<8x12xf32> to vector<8xf32>
    %33 = vector.shape_cast %32 : vector<8xf32> to vector<8x1xf32>
    %34 = arith.addf %31, %33 : vector<8x1xf32>
    %c0_22 = arith.constant 0 : index
    %c0_23 = arith.constant 0 : index
    %35 = vector.load %arg17[%c0_22, %c0_23] : memref<8x1xf32, #tpu.memory_space<vmem>>, vector<8x1xf32>
    tpu.vector_store %arg17[%c0_22, %c0_23], %34 {strides = array<i32>} : memref<8x1xf32, #tpu.memory_space<vmem>>, vector<8x1xf32>,
    %c0_24 = arith.constant 0 : index
    %c0_25 = arith.constant 0 : index
    %36 = vector.load %arg18[%c0_24, %c0_25] : memref<8x8xf32, #tpu.memory_space<vmem>>, vector<8x8xf32>
    %37 = vector.broadcast %26 : vector<8x1xf32> to vector<8x8xf32>
    %38 = arith.mulf %37, %36 : vector<8x8xf32>
    %39 = arith.truncf %29 : vector<8x12xf32> to vector<8x12xbf16>
    %cst_26 = arith.constant dense<0.000000e+00> : vector<8x8xf32>
    %40 = tpu.matmul %39, %18, %cst_26 {dimension_numbers = #tpu.dot_dimension_numbers<[1], [0], [0], [1], [0, 0, 1, 1], [], []>} : vector<8x12xbf16>, vector<12x8xbf16>, vector<8x8xf32> -> vector<8x8xf32>
    %41 = arith.addf %38, %40 : vector<8x8xf32>
    %c0_27 = arith.constant 0 : index
    %c0_28 = arith.constant 0 : index
    %42 = vector.load %arg18[%c0_27, %c0_28] : memref<8x8xf32, #tpu.memory_space<vmem>>, vector<8x8xf32>
    tpu.vector_store %arg18[%c0_27, %c0_28], %41 {strides = array<i32>} : memref<8x8xf32, #tpu.memory_space<vmem>>, vector<8x8xf32>,
    %c0_29 = arith.constant 0 : index
    %c0_30 = arith.constant 0 : index
    %43 = vector.load %arg16[%c0_29, %c0_30] : memref<8x1xf32, #tpu.memory_space<vmem>>, vector<8x1xf32>
    tpu.vector_store %arg16[%c0_29, %c0_30], %24 {strides = array<i32>} : memref<8x1xf32, #tpu.memory_space<vmem>>, vector<8x1xf32>,
    %c0_i32_31 = arith.constant 0 : i32
    %44 = arith.cmpi eq, %arg3, %c0_i32_31 : i32
    %45 = arith.extui %44 : i1 to i32
    %c0_i32_32 = arith.constant 0 : i32
    %46 = arith.cmpi ne, %45, %c0_i32_32 : i32
    scf.if %46 {
      %c0_35 = arith.constant 0 : index
      %c0_36 = arith.constant 0 : index
      %52 = vector.load %arg18[%c0_35, %c0_36] : memref<8x8xf32, #tpu.memory_space<vmem>>, vector<8x8xf32>
      %c0_37 = arith.constant 0 : index
      %c0_38 = arith.constant 0 : index
      %53 = vector.load %arg17[%c0_37, %c0_38] : memref<8x1xf32, #tpu.memory_space<vmem>>, vector<8x1xf32>
      %54 = vector.broadcast %53 : vector<8x1xf32> to vector<8x8xf32>
      %55 = arith.divf %52, %54 : vector<8x8xf32>
      %56 = arith.truncf %55 : vector<8x8xf32> to vector<8x8xbf16>
      %c0_39 = arith.constant 0 : index
      %c0_40 = arith.constant 0 : index
      %57 = vector.load %arg19[%c0_39, %c0_40] : memref<8x32xf32, #tpu.memory_space<vmem>>, vector<8x32xf32>
      %c0_41 = arith.constant 0 : index
      %c0_42 = arith.constant 0 : index
      %c0_43 = arith.constant 0 : index
      %58 = vector.load %arg9[%c0_41, %c0_42, %c0_43] : memref<1x8x32xbf16, #tpu.memory_space<vmem>>, vector<1x8x32xbf16>
      %59 = vector.shape_cast %58 : vector<1x8x32xbf16> to vector<8x32xbf16>
      %cst_44 = arith.constant dense<0.000000e+00> : vector<8x32xf32>
      %60 = tpu.matmul %56, %59, %cst_44 {dimension_numbers = #tpu.dot_dimension_numbers<[1], [0], [0], [1], [0, 0, 1, 1], [], []>} : vector<8x8xbf16>, vector<8x32xbf16>, vector<8x32xf32> -> vector<8x32xf32>
      %61 = arith.addf %57, %60 : vector<8x32xf32>
      %c0_45 = arith.constant 0 : index
      %c0_46 = arith.constant 0 : index
      %62 = vector.load %arg19[%c0_45, %c0_46] : memref<8x32xf32, #tpu.memory_space<vmem>>, vector<8x32xf32>
      tpu.vector_store %arg19[%c0_45, %c0_46], %61 {strides = array<i32>} : memref<8x32xf32, #tpu.memory_space<vmem>>, vector<8x32xf32>,
    } else {
    }
    %c3_i32 = arith.constant 3 : i32
    %47 = arith.cmpi eq, %arg2, %c3_i32 : i32
    %c0_i32_33 = arith.constant 0 : i32
    %48 = arith.cmpi eq, %arg3, %c0_i32_33 : i32
    %49 = arith.andi %47, %48 : i1
    %50 = arith.extui %49 : i1 to i32
    %c0_i32_34 = arith.constant 0 : i32
    %51 = arith.cmpi ne, %50, %c0_i32_34 : i32
    scf.if %51 {
      %c0_35 = arith.constant 0 : index
      %c0_36 = arith.constant 0 : index
      %52 = vector.load %arg19[%c0_35, %c0_36] : memref<8x32xf32, #tpu.memory_space<vmem>>, vector<8x32xf32>
      %c0_37 = arith.constant 0 : index
      %c0_38 = arith.constant 0 : index
      %c0_39 = arith.constant 0 : index
      %53 = vector.load %arg13[%c0_37, %c0_38, %c0_39] : memref<1x8x32xf32, #tpu.memory_space<vmem>>, vector<1x8x32xf32>
      %54 = vector.shape_cast %53 : vector<1x8x32xf32> to vector<8x32xf32>
      %55 = vector.shape_cast %52 : vector<8x32xf32> to vector<1x8x32xf32>
      tpu.vector_store %arg13[%c0_37, %c0_38, %c0_39], %55 {strides = array<i32>} : memref<1x8x32xf32, #tpu.memory_space<vmem>>, vector<1x8x32xf32>,
    } else {
    }
    return
  }
  func.func @transform_0(%arg0: i32, %arg1: i32, %arg2: i32, %arg3: i32) -> (i32, i32, i32) {
    %c0_i32 = arith.constant 0 : i32
    %c0_i32_0 = arith.constant 0 : i32
    return %arg0, %arg1, %c0_i32 : i32, i32, i32
  }
  func.func @transform_1(%arg0: i32, %arg1: i32, %arg2: i32, %arg3: i32) -> (i32, i32, i32) {
    %c0_i32 = arith.constant 0 : i32
    %c0_i32_0 = arith.constant 0 : i32
    return %arg0, %arg3, %c0_i32 : i32, i32, i32
  }
  func.func @transform_2(%arg0: i32, %arg1: i32, %arg2: i32, %arg3: i32) -> (i32, i32, i32) {
    %c0_i32 = arith.constant 0 : i32
    %c0_i32_0 = arith.constant 0 : i32
    %c0_i32_1 = arith.constant 0 : i32
    return %arg2, %c0_i32, %c0_i32_0 : i32, i32, i32
  }
  func.func @transform_3(%arg0: i32, %arg1: i32, %arg2: i32, %arg3: i32) -> (i32, i32, i32) {
    %c0_i32 = arith.constant 0 : i32
    %c0_i32_0 = arith.constant 0 : i32
    %c0_i32_1 = arith.constant 0 : i32
    return %arg2, %c0_i32, %c0_i32_0 : i32, i32, i32
  }
  func.func @transform_4(%arg0: i32, %arg1: i32, %arg2: i32, %arg3: i32) -> (i32, i32, i32) {
    %c0_i32 = arith.constant 0 : i32
    %c0_i32_0 = arith.constant 0 : i32
    %c0_i32_1 = arith.constant 0 : i32
    return %arg2, %c0_i32, %c0_i32_0 : i32, i32, i32
  }
  func.func @transform_5(%arg0: i32, %arg1: i32, %arg2: i32, %arg3: i32) -> (i32, i32, i32) {
    %c0_i32 = arith.constant 0 : i32
    %c0_i32_0 = arith.constant 0 : i32
    %c0_i32_1 = arith.constant 0 : i32
    return %arg2, %c0_i32, %c0_i32_0 : i32, i32, i32
  }
  func.func @transform_6(%arg0: i32, %arg1: i32, %arg2: i32, %arg3: i32) -> (i32, i32) {
    %c0_i32 = arith.constant 0 : i32
    %c0_i32_0 = arith.constant 0 : i32
    %c0_i32_1 = arith.constant 0 : i32
    return %c0_i32, %c0_i32_0 : i32, i32
  }
  func.func @transform_7(%arg0: i32, %arg1: i32, %arg2: i32, %arg3: i32) -> (i32, i32) {
    %c0_i32 = arith.constant 0 : i32
    %c0_i32_0 = arith.constant 0 : i32
    %c0_i32_1 = arith.constant 0 : i32
    return %c0_i32, %c0_i32_0 : i32, i32
  }
  func.func @transform_8(%arg0: i32, %arg1: i32, %arg2: i32, %arg3: i32) -> (i32, i32) {
    %c0_i32 = arith.constant 0 : i32
    %c0_i32_0 = arith.constant 0 : i32
    %c0_i32_1 = arith.constant 0 : i32
    return %c0_i32, %c0_i32_0 : i32, i32
  }
  func.func @transform_9(%arg0: i32, %arg1: i32, %arg2: i32, %arg3: i32) -> (i32, i32, i32) {
    %c0_i32 = arith.constant 0 : i32
    %c0_i32_0 = arith.constant 0 : i32
    return %arg0, %arg1, %c0_i32 : i32, i32, i32
  }
}

module attributes {stable_mosaic.version = 11 : i64} {
  func.func @_geglu_ffn_kernel(%arg0: i32, %arg1: i32, %arg2: memref<16x32xf32, #tpu.memory_space<vmem>>, %arg3: memref<32x128xbf16, #tpu.memory_space<vmem>>, %arg4: memref<32x128xbf16, #tpu.memory_space<vmem>>, %arg5: memref<1x128xf32, #tpu.memory_space<vmem>>, %arg6: memref<1x128xf32, #tpu.memory_space<vmem>>, %arg7: memref<128x32xbf16, #tpu.memory_space<vmem>>, %arg8: memref<1x32xf32, #tpu.memory_space<vmem>>, %arg9: memref<1x32xf32, #tpu.memory_space<vmem>>, %arg10: memref<1x32xf32, #tpu.memory_space<vmem>>, %arg11: memref<16x32xf32, #tpu.memory_space<vmem>>, %arg12: memref<16x32xbf16, #tpu.memory_space<vmem>>, %arg13: memref<16x32xf32, #tpu.memory_space<vmem>>) attributes {dimension_semantics = [#tpu.dimension_semantics<parallel>, #tpu.dimension_semantics<arbitrary>], iteration_bounds = array<i64: 1, 1>, scalar_prefetch = 0 : i64, scratch_operands = 2 : i64, tpu.core_type = #tpu.core_type<tc>, window_params = [{transform_indices = @transform_0, window_bounds = array<i64: 16, 32>}, {transform_indices = @transform_1, window_bounds = array<i64: 32, 128>}, {transform_indices = @transform_2, window_bounds = array<i64: 32, 128>}, {transform_indices = @transform_3, window_bounds = array<i64: 1, 128>}, {transform_indices = @transform_4, window_bounds = array<i64: 1, 128>}, {transform_indices = @transform_5, window_bounds = array<i64: 128, 32>}, {pipeline_mode = #tpu.pipeline_mode<synchronous>, transform_indices = @transform_6, window_bounds = array<i64: 1, 32>}, {pipeline_mode = #tpu.pipeline_mode<synchronous>, transform_indices = @transform_7, window_bounds = array<i64: 1, 32>}, {pipeline_mode = #tpu.pipeline_mode<synchronous>, transform_indices = @transform_8, window_bounds = array<i64: 1, 32>}, {transform_indices = @transform_9, window_bounds = array<i64: 16, 32>}]} {
    %c0_i32 = arith.constant 0 : i32
    %0 = arith.cmpi eq, %arg1, %c0_i32 : i32
    %1 = arith.extui %0 : i1 to i32
    %c0_i32_0 = arith.constant 0 : i32
    %2 = arith.cmpi ne, %1, %c0_i32_0 : i32
    scf.if %2 {
      %c0_23 = arith.constant 0 : index
      %c0_24 = arith.constant 0 : index
      %32 = vector.load %arg2[%c0_23, %c0_24] : memref<16x32xf32, #tpu.memory_space<vmem>>, vector<16x32xf32>
      %c0_25 = arith.constant 0 : index
      %c0_26 = arith.constant 0 : index
      %33 = vector.load %arg9[%c0_25, %c0_26] : memref<1x32xf32, #tpu.memory_space<vmem>>, vector<1x32xf32>
      %c0_27 = arith.constant 0 : index
      %c0_28 = arith.constant 0 : index
      %34 = vector.load %arg10[%c0_27, %c0_28] : memref<1x32xf32, #tpu.memory_space<vmem>>, vector<1x32xf32>
      %cst_29 = arith.constant dense<0.000000e+00> : vector<16xf32>
      %35 = vector.multi_reduction <add>, %32, %cst_29 [1] : vector<16x32xf32> to vector<16xf32>
      %36 = vector.shape_cast %35 : vector<16xf32> to vector<16x1xf32>
      %cst_30 = arith.constant 3.200000e+01 : f32
      %37 = vector.broadcast %cst_30 : f32 to vector<16x1xf32>
      %38 = arith.divf %36, %37 : vector<16x1xf32>
      %39 = vector.broadcast %38 : vector<16x1xf32> to vector<16x32xf32>
      %40 = arith.subf %32, %39 : vector<16x32xf32>
      %41 = arith.mulf %40, %40 : vector<16x32xf32>
      %cst_31 = arith.constant dense<0.000000e+00> : vector<16xf32>
      %42 = vector.multi_reduction <add>, %41, %cst_31 [1] : vector<16x32xf32> to vector<16xf32>
      %43 = vector.shape_cast %42 : vector<16xf32> to vector<16x1xf32>
      %cst_32 = arith.constant 3.200000e+01 : f32
      %44 = vector.broadcast %cst_32 : f32 to vector<16x1xf32>
      %45 = arith.divf %43, %44 : vector<16x1xf32>
      %46 = vector.broadcast %38 : vector<16x1xf32> to vector<16x32xf32>
      %47 = arith.subf %32, %46 : vector<16x32xf32>
      %cst_33 = arith.constant 9.99999974E-6 : f32
      %48 = vector.broadcast %cst_33 : f32 to vector<16x1xf32>
      %49 = arith.addf %45, %48 : vector<16x1xf32>
      %50 = math.rsqrt %49 : vector<16x1xf32>
      %51 = vector.broadcast %50 : vector<16x1xf32> to vector<16x32xf32>
      %52 = arith.mulf %47, %51 : vector<16x32xf32>
      %53 = vector.broadcast %33 : vector<1x32xf32> to vector<16x32xf32>
      %54 = arith.mulf %52, %53 : vector<16x32xf32>
      %55 = vector.broadcast %34 : vector<1x32xf32> to vector<16x32xf32>
      %56 = arith.addf %54, %55 : vector<16x32xf32>
      %57 = arith.truncf %56 : vector<16x32xf32> to vector<16x32xbf16>
      %c0_34 = arith.constant 0 : index
      %c0_35 = arith.constant 0 : index
      %58 = vector.load %arg12[%c0_34, %c0_35] : memref<16x32xbf16, #tpu.memory_space<vmem>>, vector<16x32xbf16>
      tpu.vector_store %arg12[%c0_34, %c0_35], %57 {strides = array<i32>} : memref<16x32xbf16, #tpu.memory_space<vmem>>, vector<16x32xbf16>,
      %c0_36 = arith.constant 0 : index
      %c0_37 = arith.constant 0 : index
      %59 = vector.load %arg8[%c0_36, %c0_37] : memref<1x32xf32, #tpu.memory_space<vmem>>, vector<1x32xf32>
      %60 = vector.broadcast %59 : vector<1x32xf32> to vector<16x32xf32>
      %61 = arith.addf %32, %60 : vector<16x32xf32>
      %c0_38 = arith.constant 0 : index
      %c0_39 = arith.constant 0 : index
      %62 = vector.load %arg13[%c0_38, %c0_39] : memref<16x32xf32, #tpu.memory_space<vmem>>, vector<16x32xf32>
      tpu.vector_store %arg13[%c0_38, %c0_39], %61 {strides = array<i32>} : memref<16x32xf32, #tpu.memory_space<vmem>>, vector<16x32xf32>,
    } else {
    }
    %c0 = arith.constant 0 : index
    %c0_1 = arith.constant 0 : index
    %3 = vector.load %arg12[%c0, %c0_1] : memref<16x32xbf16, #tpu.memory_space<vmem>>, vector<16x32xbf16>
    %c0_2 = arith.constant 0 : index
    %c0_3 = arith.constant 0 : index
    %4 = vector.load %arg3[%c0_2, %c0_3] : memref<32x128xbf16, #tpu.memory_space<vmem>>, vector<32x128xbf16>
    %cst = arith.constant dense<0.000000e+00> : vector<16x128xf32>
    %5 = tpu.matmul %3, %4, %cst {dimension_numbers = #tpu.dot_dimension_numbers<[1], [0], [0], [1], [0, 0, 1, 1], [], []>} : vector<16x32xbf16>, vector<32x128xbf16>, vector<16x128xf32> -> vector<16x128xf32>
    %c0_4 = arith.constant 0 : index
    %c0_5 = arith.constant 0 : index
    %6 = vector.load %arg5[%c0_4, %c0_5] : memref<1x128xf32, #tpu.memory_space<vmem>>, vector<1x128xf32>
    %7 = vector.broadcast %6 : vector<1x128xf32> to vector<16x128xf32>
    %8 = arith.addf %5, %7 : vector<16x128xf32>
    %c0_6 = arith.constant 0 : index
    %c0_7 = arith.constant 0 : index
    %9 = vector.load %arg4[%c0_6, %c0_7] : memref<32x128xbf16, #tpu.memory_space<vmem>>, vector<32x128xbf16>
    %cst_8 = arith.constant dense<0.000000e+00> : vector<16x128xf32>
    %10 = tpu.matmul %3, %9, %cst_8 {dimension_numbers = #tpu.dot_dimension_numbers<[1], [0], [0], [1], [0, 0, 1, 1], [], []>} : vector<16x32xbf16>, vector<32x128xbf16>, vector<16x128xf32> -> vector<16x128xf32>
    %c0_9 = arith.constant 0 : index
    %c0_10 = arith.constant 0 : index
    %11 = vector.load %arg6[%c0_9, %c0_10] : memref<1x128xf32, #tpu.memory_space<vmem>>, vector<1x128xf32>
    %12 = vector.broadcast %11 : vector<1x128xf32> to vector<16x128xf32>
    %13 = arith.addf %10, %12 : vector<16x128xf32>
    %cst_11 = arith.constant 5.000000e-01 : f32
    %14 = vector.broadcast %cst_11 : f32 to vector<16x128xf32>
    %15 = arith.mulf %14, %13 : vector<16x128xf32>
    %cst_12 = arith.constant 0.707106769 : f32
    %16 = vector.broadcast %cst_12 : f32 to vector<16x128xf32>
    %17 = arith.mulf %13, %16 : vector<16x128xf32>
    %18 = math.erf %17 : vector<16x128xf32>
    %cst_13 = arith.constant 1.000000e+00 : f32
    %19 = vector.broadcast %cst_13 : f32 to vector<16x128xf32>
    %20 = arith.addf %19, %18 : vector<16x128xf32>
    %21 = arith.mulf %15, %20 : vector<16x128xf32>
    %22 = arith.mulf %8, %21 : vector<16x128xf32>
    %23 = arith.truncf %22 : vector<16x128xf32> to vector<16x128xbf16>
    %c0_14 = arith.constant 0 : index
    %c0_15 = arith.constant 0 : index
    %24 = vector.load %arg13[%c0_14, %c0_15] : memref<16x32xf32, #tpu.memory_space<vmem>>, vector<16x32xf32>
    %c0_16 = arith.constant 0 : index
    %c0_17 = arith.constant 0 : index
    %25 = vector.load %arg7[%c0_16, %c0_17] : memref<128x32xbf16, #tpu.memory_space<vmem>>, vector<128x32xbf16>
    %cst_18 = arith.constant dense<0.000000e+00> : vector<16x32xf32>
    %26 = tpu.matmul %23, %25, %cst_18 {dimension_numbers = #tpu.dot_dimension_numbers<[1], [0], [0], [1], [0, 0, 1, 1], [], []>} : vector<16x128xbf16>, vector<128x32xbf16>, vector<16x32xf32> -> vector<16x32xf32>
    %27 = arith.addf %24, %26 : vector<16x32xf32>
    %c0_19 = arith.constant 0 : index
    %c0_20 = arith.constant 0 : index
    %28 = vector.load %arg13[%c0_19, %c0_20] : memref<16x32xf32, #tpu.memory_space<vmem>>, vector<16x32xf32>
    tpu.vector_store %arg13[%c0_19, %c0_20], %27 {strides = array<i32>} : memref<16x32xf32, #tpu.memory_space<vmem>>, vector<16x32xf32>,
    %c0_i32_21 = arith.constant 0 : i32
    %29 = arith.cmpi eq, %arg1, %c0_i32_21 : i32
    %30 = arith.extui %29 : i1 to i32
    %c0_i32_22 = arith.constant 0 : i32
    %31 = arith.cmpi ne, %30, %c0_i32_22 : i32
    scf.if %31 {
      %c0_23 = arith.constant 0 : index
      %c0_24 = arith.constant 0 : index
      %32 = vector.load %arg13[%c0_23, %c0_24] : memref<16x32xf32, #tpu.memory_space<vmem>>, vector<16x32xf32>
      %c0_25 = arith.constant 0 : index
      %c0_26 = arith.constant 0 : index
      %33 = vector.load %arg11[%c0_25, %c0_26] : memref<16x32xf32, #tpu.memory_space<vmem>>, vector<16x32xf32>
      tpu.vector_store %arg11[%c0_25, %c0_26], %32 {strides = array<i32>} : memref<16x32xf32, #tpu.memory_space<vmem>>, vector<16x32xf32>,
    } else {
    }
    return
  }
  func.func @transform_0(%arg0: i32, %arg1: i32) -> (i32, i32) {
    %c0_i32 = arith.constant 0 : i32
    %c0_i32_0 = arith.constant 0 : i32
    return %arg0, %c0_i32 : i32, i32
  }
  func.func @transform_1(%arg0: i32, %arg1: i32) -> (i32, i32) {
    %c0_i32 = arith.constant 0 : i32
    %c0_i32_0 = arith.constant 0 : i32
    return %c0_i32, %arg1 : i32, i32
  }
  func.func @transform_2(%arg0: i32, %arg1: i32) -> (i32, i32) {
    %c0_i32 = arith.constant 0 : i32
    %c0_i32_0 = arith.constant 0 : i32
    return %c0_i32, %arg1 : i32, i32
  }
  func.func @transform_3(%arg0: i32, %arg1: i32) -> (i32, i32) {
    %c0_i32 = arith.constant 0 : i32
    %c0_i32_0 = arith.constant 0 : i32
    return %c0_i32, %arg1 : i32, i32
  }
  func.func @transform_4(%arg0: i32, %arg1: i32) -> (i32, i32) {
    %c0_i32 = arith.constant 0 : i32
    %c0_i32_0 = arith.constant 0 : i32
    return %c0_i32, %arg1 : i32, i32
  }
  func.func @transform_5(%arg0: i32, %arg1: i32) -> (i32, i32) {
    %c0_i32 = arith.constant 0 : i32
    %c0_i32_0 = arith.constant 0 : i32
    return %arg1, %c0_i32 : i32, i32
  }
  func.func @transform_6(%arg0: i32, %arg1: i32) -> (i32, i32) {
    %c0_i32 = arith.constant 0 : i32
    %c0_i32_0 = arith.constant 0 : i32
    %c0_i32_1 = arith.constant 0 : i32
    return %c0_i32, %c0_i32_0 : i32, i32
  }
  func.func @transform_7(%arg0: i32, %arg1: i32) -> (i32, i32) {
    %c0_i32 = arith.constant 0 : i32
    %c0_i32_0 = arith.constant 0 : i32
    %c0_i32_1 = arith.constant 0 : i32
    return %c0_i32, %c0_i32_0 : i32, i32
  }
  func.func @transform_8(%arg0: i32, %arg1: i32) -> (i32, i32) {
    %c0_i32 = arith.constant 0 : i32
    %c0_i32_0 = arith.constant 0 : i32
    %c0_i32_1 = arith.constant 0 : i32
    return %c0_i32, %c0_i32_0 : i32, i32
  }
  func.func @transform_9(%arg0: i32, %arg1: i32) -> (i32, i32) {
    %c0_i32 = arith.constant 0 : i32
    %c0_i32_0 = arith.constant 0 : i32
    return %arg0, %c0_i32 : i32, i32
  }
}

</mosaic_0001>

<bundles_post_ra>
// kernel: basic_transformer_block_fwd.3
= control target key start
LH: loop header
LB: loop body
LE: loop exit
PB: predicated region body
PF: predicated region fallthrough
CT: control target
= control target key end

     0   :  { %s1185_s30 = smov 0   ;;  %s1187_s10 = smov 0   ;;  %s1326_s0 = inlined_call_operand.vmem [shape: f32[2,8,32], index: 0, kind: input, shape index: {}, may-alias: {0,1}]   ;;  %s1327_s1 = inlined_call_operand.vmem [shape: f32[2,8,32], index: 1, kind: input, shape index: {}, may-alias: {0,1}]   ;;  %s1328_s2 = inlined_call_operand.vmem [shape: bf16[4,32,8], index: 2, kind: input, shape index: {}]   ;;  %s1329_s3 = inlined_call_operand.vmem [shape: bf16[4,32,8], index: 3, kind: input, shape index: {}]   ;;  %s1330_s4 = inlined_call_operand.vmem [shape: bf16[4,32,8], index: 4, kind: input, shape index: {}]   ;;  %s1331_s5 = inlined_call_operand.vmem [shape: bf16[4,8,32], index: 5, kind: input, shape index: {}]   ;;  %s1332_s6 = inlined_call_operand.vmem [shape: f32[1,32], index: 6, kind: input, shape index: {}]   ;;  %s1333_s7 = inlined_call_operand.vmem [shape: f32[1,32], index: 7, kind: input, shape index: {}]   ;;  %s1334_s8 = inlined_call_operand.vmem [shape: f32[1,32], index: 8, kind: input, shape index: {}]   ;;  %s1335_s9 = inlined_call_operand.vmem [shape: f32[2,8,32], index: 9, kind: output, shape index: {}]  }
   0x1   :  { %1336 = sst [smem:[#allocation10_spill]] %s1326_s0  ;;  %s1189_s11 = smov 0  }
   0x2   :  { %s1191_s12 = smov 0   ;;  %s1193_s13 = smov 0  }
   0x3 LB: > { %s37_s14 = sadd.s32 1, %s1120_s11  ;;  %s45_s15 = sadd.s32 1, %s1124_s12  ;;  %s1128_s13 = sphi %s1193_s13, %s19_s13   ;;  %s1124_s12 = sphi %s1191_s12, %s1346_s12   ;;  %s1120_s11 = sphi %s1189_s11, %s1345_s11   ;;  %s1116_s10 = sphi %s1187_s10, %s1344_s10   ;;  %s1112_s30 = sphi %s1185_s30, %s1343_s30  }
   0x4   : > { %p39_p0 = scmp.ge.s32.totalorder %s37_s14, 4  ;;  %p967_p1 = scmp.ge.s32.totalorder %s1128_s13, 1 }
   0x5   : > { %p372_p2 = scmp.lt.s32.totalorder %s1128_s13, 9 }
   0x6   : > { %s1348_s14 = smov (%p39_p0, %s37_s14), 0  ;;  %s1350_s15 = smov (!%p39_p0, %s45_s15), %s1124_s12 }
   0x7   : > { %1337 = sst [smem:[#allocation8_spill]] %s1348_s14  ;;  %p373_p3 = pnand %p967_p1, %p372_p2 }
   0x8   : > { %p47_p4 = scmp.ge.s32.totalorder %s1350_s15, 2  ;;  %p438_p5 = scmp.lt.s32.totalorder (!%p373_p3), %s1116_s10, 1 }
   0x9   : > { %376 = sbr.rel (%p373_p3) target bundleno = 1452 (0x5ac), region = 56  ;;  %p452_p6 = scmp.lt.s32.totalorder (!%p373_p3), %s1112_s30, 3 }
   0xa   : > { %s1352_s15 = smov (%p47_p4, %s1350_s15), 0  ;;  %p479_p7 = scmp.eq.s32.totalorder (!%p373_p3), %s1112_s30, 0 }
   0xb   : > { %1338 = sst [smem:[#allocation9_spill]] %s1352_s15 }
   0xc   : > { %s1339_s0 = sld [smem:[#allocation10_spill]] (!%p373_p3) }
   0xe   : > { %s1354_s10 = smov (!%p438_p5, %s1116_s10), 1  ;;  %vm488_vm0 = vcmask (%p479_p7), 261120   ;;  %v1068_v1 = vld [vmem:[%s1332_s6] ss:$0 sm:$0xff] (%p479_p7)  ;;  %v1130_v4 = vmov (%p479_p7), 32.0   ;;  %vm527_vm5 = vcmask (%p479_p7), 257024  }
   0xf   : > { %s453_s16 = scalar_select %p452_p6, %s1112_s30, 3  ;;  %1071 = vrcp.f32 (%p479_p7), %v1130_v4  ;;  %v1069_v25 = vld [vmem:[%s1333_s7] ss:$0 sm:$0xff] (%p479_p7) }
  0x10   : > { %s1220_s17 = sshll.u32 %s1354_s10, 3  ;;  %484 = sbr.rel (!%p479_p7) target bundleno = 291 (0x123), region = 60  ;;  %v1070_v27 = vld [vmem:[%s1334_s8] ss:$0 sm:$0xff] (%p479_p7) }
  0x11   : > { %s1012_s24 = sshll.u32 %s453_s16, 4  ;;  %s976_s25 = sshll.u32 %s453_s16, 2 }
  0x12   : > { %s444_s20 = scalar_lea.vmem %s1339_s0, %s1220_s17  ;;  %s1233_s28 = scalar_lea.vmem %s1328_s2, %s1012_s24 }
  0x13   : > { %s1238_s15 = scalar_lea.vmem %s1329_s3, %s1012_s24  ;;  %s1243_s0 = scalar_lea.vmem %s1330_s4, %s1012_s24  ;;  %v485_v0 = vld [vmem:[%s444_s20] sm:$0xff] (%p479_p7) }
  0x14   : > { %s1248_s22 = scalar_lea.vmem %s1331_s5, %s976_s25  ;;  %s477_s26 = scalar_lea.vmem %s1335_s9, %s1220_s17  ;;  %v489_v2 = vsel (%p479_p7), %vm488_vm0, %v485_v0, 0.0  ;;  %v533_v3 = vadd.f32 (%p479_p7), %v1068_v1, %v485_v0 }
  0x15   : > { %490 = vadd.xlane.f32.xlu0 %v489_v2  ;;  %v1072_v5 = vpop.eup %1071 }
  0x16   : > { %534 = vst.msk [vmem:[#allocation7] sm:$0xff] %vm488_vm0, %v533_v3  ;;  %v493_v6 = vmul.f32 32.0, %v1072_v5  ;;  %vm497_vm1 = vweird.f32 %v1072_v5 }
  0x18   : > { %v494_v7 = vsub.f32 1.0, %v493_v6 }
  0x1a   : > { %v495_v8 = vmul.f32 %v1072_v5, %v494_v7 }
  0x1c   : > { %v496_v9 = vadd.f32 %v1072_v5, %v495_v8 }
  0x1e   : > { %v498_v10 = vsel %vm497_vm1, %v1072_v5, %v496_v9 }
  0x88   : > { %v491_v11 = vpop.xlane.xlu0 %490 }
  0x89   : > { %v499_v12 = vmul.f32 %v498_v10, %v491_v11 }
  0x8b   : > { %v500_v13 = vsub.f32 %v485_v0, %v499_v12 }
  0x8d   : > { %v501_v14 = vmul.f32 %v500_v13, %v500_v13 }
  0x8f   : > { %v502_v15 = vsel %vm488_vm0, %v501_v14, 0.0 }
  0x90   : > { %503 = vadd.xlane.f32.xlu0 %v502_v15 }
 0x103   : > { %v504_v16 = vpop.xlane.xlu0 %503 }
 0x104   : > { %v505_v17 = vmul.f32 %v504_v16, %v498_v10 }
 0x106   : > { %v506_v18 = vadd.f32 1e-05, %v505_v17 }
 0x108   : > { %1073 = vrsqrt.f32 %v506_v18  ;;  %vm513_vm3 = vweird.f32 %v506_v18 }
 0x10e   : > { %v1074_v19 = vpop.eup %1073 }
 0x10f   : > { %v508_v20 = vmul.f32 %v1074_v19, %v506_v18  ;;  %vm514_vm2 = vweird.f32 %v1074_v19 }
 0x110   : > { %vm515_vm4 = vmor %vm513_vm3, %vm514_vm2 }
 0x111   : > { %v509_v21 = vmul.f32 %v1074_v19, %v508_v20 }
 0x113   : > { %v510_v22 = vmul.f32 0.5, %v509_v21 }
 0x115   : > { %v511_v23 = vsub.f32 1.5, %v510_v22 }
 0x117   : > { %v512_v24 = vmul.f32 %v1074_v19, %v511_v23 }
 0x119   : > { %v516_v26 = vsel %vm515_vm4, %v1074_v19, %v512_v24 }
 0x11a   : > { %v517_v28 = vmul.f32 %v516_v26, %v500_v13 }
 0x11c   : > { %v521_v29 = vmul.f32 %v1069_v25, %v517_v28 }
 0x11e   : > { %v525_v30 = vadd.f32 %v1070_v27, %v521_v29 }
 0x120   : > { %v526_v31 = vpack.c.bf16 %v525_v30, %v525_v30 }
 0x122   : > { %528 = vst.msk [vmem:[#allocation2] sm:$0xf] %vm527_vm5, %v526_v31 }
 0x123 PF: > { %vm555_vm6 = vcmask 261120   ;;  %s1340_s18 = scalar_lea.vmem %s1327_s1, %s1220_s17  ;;  %v1131_v34 = vmov 32.0   ;;  %v1017_v46 = vld [vmem:[%s1233_s28 + $0x8] sm:$0xff]  ;;  %v1016_v47 = vld [vmem:[%s1233_s28] sm:$0xff]  ;;  %vm573_vm11 = vcmask 60416   ;;  %vm578_vm12 = vcmask 64512  }
 0x124   : > { %v580_v32 = vld [vmem:[%s1340_s18] sm:$0xff]  ;;  %1080 = vrcp.f32 %v1131_v34  ;;  %565 = vmatpush.bf16.msra.mxu0 %v1017_v46  ;;  %v1019_v49 = vld [vmem:[%s1238_s15 + $0x8] sm:$0xff]  ;;  %v1132_v8 = vmov 0.0   ;;  %vm741_vm13 = vcmask 1043456   ;;  %vm575_vm14 = vcmask 7168   ;;  %p810_p8 = scmp.eq.s32.totalorder %s1112_s30, 3 }
 0x125   : > { %v584_v33 = vsel %vm555_vm6, %v580_v32, 0.0  ;;  %v1021_v50 = vld [vmem:[%s1243_s0 + $0x8] sm:$0xff]  ;;  %647 = vmatpush.bf16.msra.mxu1 %v1019_v49  ;;  %v1018_v51 = vld [vmem:[%s1238_s15] sm:$0xff]  ;;  %579 = vst.msk [vmem:[#allocation6] sm:$0xff] %vm578_vm12, %v1132_v8  ;;  %v1133_v18 = vmov -inf   ;;  %v1134_v22 = vmov 0  }
 0x126   : > { %585 = vadd.xlane.f32.xlu0 %v584_v33  ;;  %677 = vmatpush.bf16.msra.mxu2 %v1021_v50  ;;  %v1020_v52 = vld [vmem:[%s1243_s0] sm:$0xff]  ;;  %576 = vst.msk [vmem:[#allocation4] sm:$0xff] %vm575_vm14, %v1133_v18 }
 0x127   : > { %v1078_v62 = vld [vmem:[%s1333_s7] ss:$0 sm:$0xff]  ;;  %577 = vst.msk [vmem:[#allocation5] sm:$0xff] %vm575_vm14, %v1132_v8  ;;  %1075 = vset.pattern.permute.xlu1 %v1134_v22  ;;  %1077 = vset.pattern.permute.xlu0 %v1134_v22 }
 0x128   : > { %566 = vmatpush.bf16.msra.mxu0 %v1016_v47  ;;  %v1079_v1 = vld [vmem:[%s1334_s8] ss:$0 sm:$0xff]  ;;  %1076 = vset.pattern.permute.xlu2 %v1134_v22 }
 0x129   : > { %v538_v48 = vld [vmem:[#allocation2] sm:$0xf]  ;;  %648 = vmatpush.bf16.msra.mxu1 %v1018_v51 }
 0x12a   : > { %v1081_v35 = vpop.eup %1080  ;;  %678 = vmatpush.bf16.msra.mxu2 %v1020_v52  ;;  %v788_v46 = vld [vmem:[%s1248_s22] sm:$0xf] }
 0x12b   : > { %v588_v36 = vmul.f32 32.0, %v1081_v35  ;;  %vm592_vm7 = vweird.f32 %v1081_v35  ;;  %987 = vmatmul.msk.bf16.vlgmr.msra.gmra.mxu0 %vm555_vm6, %v538_v48  ;;  %v793_v47 = vsel %vm741_vm13, %v788_v46, 0 }
 0x12d   : > { %v589_v37 = vsub.f32 1.0, %v588_v36  ;;  %v706_v23 = vld [vmem:[#allocation4] sm:$0xff]  ;;  %802 = vmatpush.bf16.msrb.mxu1 %v793_v47 }
 0x12f   : > { %v590_v38 = vmul.f32 %v1081_v35, %v589_v37 }
 0x131   : > { %v591_v39 = vadd.f32 %v1081_v35, %v590_v38 }
 0x133   : > { %v593_v40 = vsel %vm592_vm7, %v1081_v35, %v591_v39  ;;  %v722_v35 = vld [vmem:[#allocation5] sm:$0xff]  ;;  %v730_v39 = vld [vmem:[#allocation6] sm:$0xff] }
 0x199   : > { %v586_v41 = vpop.xlane.xlu0 %585 }
 0x19a   : > { %v594_v42 = vmul.f32 %v593_v40, %v586_v41 }
 0x19c   : > { %v595_v43 = vsub.f32 %v580_v32, %v594_v42 }
 0x19e   : > { %v596_v44 = vmul.f32 %v595_v43, %v595_v43 }
 0x1a0   : > { %v597_v45 = vsel %vm555_vm6, %v596_v44, 0.0 }
 0x1a1   : > { %598 = vadd.xlane.f32.xlu0 %v597_v45 }
 0x1a8   : > { %v568_v5 = vpop.f32.mrf.mxu0 }
 0x1a9   : > { %v572_v6 = vpack.c.bf16 %v568_v5, %v568_v5 }
 0x1ab   : > { %574 = vst.msk [vmem:[#allocation3] sm:$0xf] %vm573_vm11, %v572_v6 }
 0x1b0   : > { %v570_v7 = vpop.f32.mrf.mxu0 }
 0x1b2   : > { %v685_v15 = vld [vmem:[#allocation3] sm:$0xf] }
 0x214   : > { %v599_v53 = vpop.xlane.xlu0 %598 }
 0x215   : > { %v600_v54 = vmul.f32 %v599_v53, %v593_v40 }
 0x217   : > { %v601_v55 = vadd.f32 1e-05, %v600_v54 }
 0x219   : > { %1082 = vrsqrt.f32 %v601_v55  ;;  %vm608_vm9 = vweird.f32 %v601_v55 }
 0x21f   : > { %v1083_v56 = vpop.eup %1082 }
 0x220   : > { %v603_v57 = vmul.f32 %v1083_v56, %v601_v55  ;;  %vm609_vm8 = vweird.f32 %v1083_v56 }
 0x221   : > { %vm610_vm10 = vmor %vm608_vm9, %vm609_vm8 }
 0x222   : > { %v604_v58 = vmul.f32 %v1083_v56, %v603_v57 }
 0x224   : > { %v605_v59 = vmul.f32 0.5, %v604_v58 }
 0x226   : > { %v606_v60 = vsub.f32 1.5, %v605_v59 }
 0x228   : > { %v607_v61 = vmul.f32 %v1083_v56, %v606_v60 }
 0x22a   : > { %v611_v63 = vsel %vm610_vm10, %v1083_v56, %v607_v61 }
 0x22b   : > { %v612_v0 = vmul.f32 %v611_v63, %v595_v43 }
 0x22d   : > { %v616_v2 = vmul.f32 %v1078_v62, %v612_v0  ;;  %v787_v62 = vld [vmem:[#allocation7] sm:$0xff] }
 0x22f   : > { %v620_v3 = vadd.f32 %v1079_v1, %v616_v2 }
 0x231   : > { %v621_v4 = vpack.c.bf16 %v620_v3, %v620_v3 }
 0x233   : > { %996 = vmatmul.msk.bf16.vlgmr.msra.gmra.mxu1 %vm555_vm6, %v621_v4  ;;  %1005 = vmatmul.msk.bf16.vlgmr.msra.gmra.mxu2 %vm555_vm6, %v621_v4 }
 0x2b0   : > { %v650_v9 = vpop.f32.mrf.mxu1 }
 0x2b1   : > { %v654_v10 = vpack.c.bf16 %v650_v9, %v650_v9 }
 0x2b3   : > { %v691_v11 = vsel %vm578_vm12, %v654_v10, 0 }
 0x2b4   : > { %700 = vmatpush.bf16.xpose.msra.mxu3 %v691_v11 }
 0x2b6   : > { %v680_v12 = vpop.f32.mrf.mxu2 }
 0x2b7   : > { %v684_v13 = vpack.c.bf16 %v680_v12, %v680_v12 }
 0x2b8   : > { %v652_v14 = vpop.f32.mrf.mxu1 }
 0x2b9   : > { %v743_v16 = vsel %vm741_vm13, %v684_v13, 0 }
 0x2ba   : > { %752 = vmatpush.bf16.msrb.mxu0 %v743_v16 }
 0x2bb   : > { %1006 = vmatmul.msk.bf16.vlgmr.msra.gmra.mxu3 %vm578_vm12, %v685_v15 }
 0x2be   : > { %v682_v17 = vpop.f32.mrf.mxu2 }
 0x33e   : > { %v702_v19 = vpop.f32.mrf.mxu3 }
 0x33f   : > { %v707_v20 = vsel %vm578_vm12, %v702_v19, -inf }
 0x340   : > { %708 = vmax.xlane.f32.xlu1 %v707_v20 }
 0x346   : > { %v704_v21 = vpop.f32.mrf.mxu3 }
 0x3b3   : > { %v709_v24 = vpop.xlane.xlu1 %708 }
 0x3b4   : > { %v710_v25 = vmax.f32 %v706_v23, %v709_v24 }
 0x3b6   : > { %v711_v26 = vsub.f32 %v706_v23, %v710_v25  ;;  %760 = vst.msk [vmem:[#allocation4] sm:$0xff] %vm575_vm14, %v710_v25  ;;  %716 = vperm.xlu1 %1075, %v710_v25  }
 0x3b8   : > { %v712_v27 = vmul.f32 1.442695, %v711_v26 }
 0x3ba   : > { %1084 = vpow2.f32 %v712_v27 }
 0x3c0   : > { %v1085_v28 = vpop.eup %1084 }
 0x3c1   : > { %733 = vperm.xlu0 %1077, %v1085_v28   ;;  %v723_v36 = vmul.f32 %v1085_v28, %v722_v35 }
 0x428   : > { %v717_v29 = vpop.permute.xlu1 %716 }
 0x429   : > { %v719_v30 = vsub.f32 %v702_v19, %v717_v29 }
 0x42b   : > { %v720_v31 = vmul.f32 1.442695, %v719_v30 }
 0x42d   : > { %1086 = vpow2.f32 %v720_v31 }
 0x433   : > { %v1087_v32 = vpop.eup %1086  ;;  %v734_v40 = vpop.permute.xlu0 %733 }
 0x434   : > { %v724_v33 = vsel %vm578_vm12, %v1087_v32, 0.0  ;;  %v737_v34 = vpack.c.bf16 %v1087_v32, %v1087_v32  ;;  %v736_v41 = vmul.f32 %v734_v40, %v730_v39 }
 0x435   : > { %725 = vadd.xlane.f32.xlu2 %v724_v33 }
 0x436   : > { %1007 = vmatmul.msk.bf16.vlgmr.msrb.gmra.mxu0 %vm578_vm12, %v737_v34 }
 0x4a8   : > { %v726_v37 = vpop.xlane.xlu2 %725 }
 0x4a9   : > { %v727_v38 = vadd.f32 %v726_v37, %v723_v36 }
 0x4ab   : > { %729 = vst.msk [vmem:[#allocation5] sm:$0xff] %vm575_vm14, %v727_v38 }
 0x4b2   : > { %v765_v42 = vld [vmem:[#allocation5] sm:$0xff] }
 0x4b3   : > { %768 = vperm.xlu2 %1076, %v765_v42   ;;  %v754_v43 = vpop.f32.mrf.mxu0 }
 0x4b4   : > { %v758_v44 = vadd.f32 %v754_v43, %v736_v41 }
 0x4b6   : > { %759 = vst.msk [vmem:[#allocation6] sm:$0xff] %vm578_vm12, %v758_v44 }
 0x4bb   : > { %v756_v45 = vpop.f32.mrf.mxu0 }
 0x4bd   : > { %v764_v59 = vld [vmem:[#allocation6] sm:$0xff] }
 0x50d   : > { %v769_v48 = vpop.permute.xlu2 %768 }
 0x50e   : > { %1088 = vrcp.f32 %v769_v48  ;;  %v782_v52 = vand.u32 2147483648, %v769_v48  ;;  %v780_v54 = vand.u32 2147483647, %v769_v48  ;;  %vm776_vm0 = vweird.f32 %v769_v48 }
 0x510   : > { %v783_v56 = vor.u32 1.1754944e-38, %v782_v52  ;;  %vm781_vm2 = vcmp.eq.f32.partialorder %v780_v54, 8.507059e+37 }
 0x514   : > { %v1089_v49 = vpop.eup %1088 }
 0x515   : > { %v772_v50 = vmul.f32 %v1089_v49, %v769_v48  ;;  %vm777_vm15 = vweird.f32 %v1089_v49 }
 0x516   : > { %vm778_vm1 = vmor %vm776_vm0, %vm777_vm15 }
 0x517   : > { %v773_v51 = vsub.f32 1.0, %v772_v50 }
 0x519   : > { %v774_v53 = vmul.f32 %v1089_v49, %v773_v51 }
 0x51b   : > { %v775_v55 = vadd.f32 %v1089_v49, %v774_v53 }
 0x51d   : > { %v779_v57 = vsel %vm778_vm1, %v1089_v49, %v775_v55 }
 0x51e   : > { %v784_v58 = vsel %vm781_vm2, %v783_v56, %v779_v57 }
 0x51f   : > { %v785_v60 = vmul.f32 %v784_v58, %v764_v59 }
 0x521   : > { %v786_v61 = vpack.c.bf16 %v785_v60, %v785_v60 }
 0x523   : > { %1008 = vmatmul.msk.bf16.vlgmr.msrb.gmra.mxu1 %vm578_vm12, %v786_v61 }
 0x5a0   : > { %v804_v63 = vpop.f32.mrf.mxu1 }
 0x5a1   : > { %v808_v0 = vadd.f32 %v804_v63, %v787_v62 }
 0x5a3   : > { %809 = vst.msk [vmem:[#allocation7] sm:$0xff] %vm555_vm6, %v808_v0 }
 0x5a4   : > { %814 = sbr.rel (!%p810_p8) target bundleno = 1452 (0x5ac), region = 72 }
 0x5a8   : > { %v806_v1 = vpop.f32.mrf.mxu1 }
 0x5aa   : > { %v815_v2 = vld [vmem:[#allocation7] sm:$0xff] }
 0x5ab   : > { %816 = vst.msk [vmem:[%s477_s26] sm:$0xff] %vm555_vm6, %v815_v2 }
 0x5ac PF: > { %s19_s13 = sadd.s32 1, %s1128_s13   ;;  %s1341_s16 = sld [smem:[#allocation8_spill]] }
 0x5ad   : > { %p16_p9 = scmp.ge.s32.totalorder %s19_s13, 10   ;;  %s1342_s27 = sld [smem:[#allocation9_spill]] }
 0x5ae   : > { %s1343_s30 = smov %s1120_s11  ;;  %s1344_s10 = smov %s1124_s12 }
 0x5af   :  { %18 = sbr.rel (!%p16_p9) target bundleno = 3 (0x3), region = 117 }
 0x5b2   : > { %s1345_s11 = smov %s1341_s16 }
 0x5b3   : > { %s1346_s12 = smov %s1342_s27 }

// kernel: basic_transformer_block_fwd.5
= control target key start
LH: loop header
LB: loop body
LE: loop exit
PB: predicated region body
PF: predicated region fallthrough
CT: control target
= control target key end

     0   :  { %vm42_vm0 = vcmask 261120   ;;  %s654_s0 = inlined_call_operand.vmem [shape: f32[16,32], index: 0, kind: input, shape index: {}]   ;;  %s655_s1 = inlined_call_operand.vmem [shape: bf16[32,128], index: 1, kind: input, shape index: {}]   ;;  %s656_s2 = inlined_call_operand.vmem [shape: bf16[32,128], index: 2, kind: input, shape index: {}]   ;;  %s657_s3 = inlined_call_operand.vmem [shape: f32[1,128], index: 3, kind: input, shape index: {}]   ;;  %s658_s4 = inlined_call_operand.vmem [shape: f32[1,128], index: 4, kind: input, shape index: {}]   ;;  %s659_s5 = inlined_call_operand.vmem [shape: bf16[128,32], index: 5, kind: input, shape index: {}]   ;;  %s660_s6 = inlined_call_operand.vmem [shape: f32[1,32], index: 6, kind: input, shape index: {}]   ;;  %s661_s7 = inlined_call_operand.vmem [shape: f32[1,32], index: 7, kind: input, shape index: {}]   ;;  %s662_s8 = inlined_call_operand.vmem [shape: f32[1,32], index: 8, kind: input, shape index: {}]   ;;  %s663_s9 = inlined_call_operand.hbm [shape: f32[16,32], index: 9, kind: output, shape index: {}]  }
   0x1   :  { %v38_v0 = vld [vmem:[%s654_s0] sm:$0xff]  ;;  %v39_v3 = vld [vmem:[%s654_s0 + $0x8] sm:$0xff] }
   0x2   :  { %v469_v1 = vld [vmem:[%s660_s6] ss:$0 sm:$0xff]  ;;  %v43_v2 = vsel %vm42_vm0, %v38_v0, 0.0 }
   0x3   :  { %v113_v4 = vadd.f32 %v469_v1, %v38_v0  ;;  %44 = vadd.xlane.f32.xlu0 %v43_v2  ;;  %v114_v5 = vadd.f32 %v469_v1, %v39_v3 }
   0x4   :  { %14 = vsyncpa [#allocation5], 0  ;;  %v46_v6 = vsel %vm42_vm0, %v39_v3, 0.0  ;;  %v510_v7 = vmov 32.0   ;;  %v454_v27 = vld [vmem:[%s655_s1 + $0x8] sm:$0xff]  ;;  %v453_v31 = vld [vmem:[%s655_s1] sm:$0xff] }
   0x5   :  { %115 = vst.msk [vmem:[#allocation3] sm:$0xff] %vm42_vm0, %v113_v4  ;;  %474 = vrcp.f32 %v510_v7  ;;  %v456_v28 = vld [vmem:[%s656_s2 + $0x8] sm:$0xff]  ;;  %154 = vmatpush.bf16.msra.mxu0 %v454_v27  ;;  %v455_v32 = vld [vmem:[%s656_s2] sm:$0xff]  ;;  %vm106_vm6 = vcmask 257024   ;;  %v464_v63 = vld [vmem:[%s659_s5 + $0x38] sm:$0xff]  ;;  %s384_s19 = sshll.u32 %s663_s9, 4  ;;  %s385_s19 = int_to_ptr.hbm [resolvable:$true] %s384_s19 }
   0x6   :  { %116 = vst.msk [vmem:[#allocation3 + $0x8] sm:$0xff] %vm42_vm0, %v114_v5  ;;  %188 = vmatpush.bf16.msra.mxu1 %v456_v28  ;;  %v470_v42 = vld [vmem:[%s661_s7] ss:$0 sm:$0xff]  ;;  %353 = vmatpush.bf16.msra.mxu2 %v464_v63  ;;  %v463_v2 = vld [vmem:[%s659_s5 + $0x30] sm:$0xff]  ;;  %s512_s20 = smov 128   ;;  %s513_s21 = smov 8  }
   0x7   :  { %v471_v45 = vld [vmem:[%s662_s8] ss:$0 sm:$0xff] }
   0x8   :  { %v473_v59 = vld [vmem:[%s658_s4] ss:$0 sm:$0xff] }
   0x9   :  { %155 = vmatpush.bf16.msra.mxu0 %v453_v31 }
   0xa   :  { %189 = vmatpush.bf16.msra.mxu1 %v455_v32  ;;  %354 = vmatpush.bf16.msra.mxu2 %v463_v2 }
   0xb   :  { %47 = vadd.xlane.f32.xlu0 %v46_v6  ;;  %v475_v8 = vpop.eup %474 }
   0xc   :  { %v50_v9 = vmul.f32 32.0, %v475_v8  ;;  %vm54_vm1 = vweird.f32 %v475_v8 }
   0xe   :  { %v51_v10 = vsub.f32 1.0, %v50_v9  ;;  %v462_v9 = vld [vmem:[%s659_s5 + $0x28] sm:$0xff] }
   0xf   :  { %355 = vmatpush.bf16.msra.mxu2 %v462_v9 }
  0x10   :  { %v52_v11 = vmul.f32 %v475_v8, %v51_v10 }
  0x12   :  { %v53_v12 = vadd.f32 %v475_v8, %v52_v11 }
  0x14   :  { %v55_v13 = vsel %vm54_vm1, %v475_v8, %v53_v12 }
  0x76   :  { %v45_v14 = vpop.xlane.xlu0 %44 }
  0x77   :  { %v56_v15 = vmul.f32 %v55_v13, %v45_v14 }
  0x79   :  { %v58_v16 = vsub.f32 %v38_v0, %v56_v15  ;;  %v461_v15 = vld [vmem:[%s659_s5 + $0x20] sm:$0xff] }
  0x7a   :  { %356 = vmatpush.bf16.msra.mxu2 %v461_v15 }
  0x7b   :  { %v60_v17 = vmul.f32 %v58_v16, %v58_v16 }
  0x7d   :  { %v62_v18 = vsel %vm42_vm0, %v60_v17, 0.0 }
  0x7e   :  { %63 = vadd.xlane.f32.xlu1 %v62_v18  ;;  %v48_v19 = vpop.xlane.xlu0 %47 }
  0x7f   :  { %v57_v20 = vmul.f32 %v55_v13, %v48_v19 }
  0x81   :  { %v59_v21 = vsub.f32 %v39_v3, %v57_v20 }
  0x83   :  { %v61_v22 = vmul.f32 %v59_v21, %v59_v21 }
  0x85   :  { %v65_v23 = vsel %vm42_vm0, %v61_v22, 0.0  ;;  %v460_v22 = vld [vmem:[%s659_s5 + $0x18] sm:$0xff] }
  0x86   :  { %66 = vadd.xlane.f32.xlu1 %v65_v23  ;;  %357 = vmatpush.bf16.msra.mxu2 %v460_v22 }
  0xf1   :  { %v64_v24 = vpop.xlane.xlu1 %63 }
  0xf2   :  { %v68_v25 = vmul.f32 %v64_v24, %v55_v13 }
  0xf4   :  { %v70_v26 = vadd.f32 1e-05, %v68_v25 }
  0xf6   :  { %476 = vrsqrt.f32 %v70_v26  ;;  %vm78_vm3 = vweird.f32 %v70_v26 }
  0xf9   :  { %v67_v29 = vpop.xlane.xlu1 %66 }
  0xfa   :  { %v69_v30 = vmul.f32 %v67_v29, %v55_v13 }
  0xfc   :  { %v477_v33 = vpop.eup %476  ;;  %v71_v34 = vadd.f32 1e-05, %v69_v30  ;;  %v459_v30 = vld [vmem:[%s659_s5 + $0x10] sm:$0xff] }
  0xfd   :  { %v73_v35 = vmul.f32 %v477_v33, %v70_v26  ;;  %vm79_vm2 = vweird.f32 %v477_v33  ;;  %358 = vmatpush.bf16.msra.mxu2 %v459_v30 }
  0xfe   :  { %478 = vrsqrt.f32 %v71_v34  ;;  %vm80_vm4 = vmor %vm78_vm3, %vm79_vm2  ;;  %vm88_vm7 = vweird.f32 %v71_v34 }
  0xff   :  { %v74_v36 = vmul.f32 %v477_v33, %v73_v35 }
 0x101   :  { %v75_v37 = vmul.f32 0.5, %v74_v36 }
 0x103   :  { %v76_v38 = vsub.f32 1.5, %v75_v37  ;;  %v458_v37 = vld [vmem:[%s659_s5 + $0x8] sm:$0xff] }
 0x104   :  { %v479_v39 = vpop.eup %478  ;;  %359 = vmatpush.bf16.msra.mxu2 %v458_v37 }
 0x105   :  { %v77_v40 = vmul.f32 %v477_v33, %v76_v38  ;;  %v83_v41 = vmul.f32 %v479_v39, %v71_v34  ;;  %vm89_vm5 = vweird.f32 %v479_v39 }
 0x106   :  { %vm90_vm8 = vmor %vm88_vm7, %vm89_vm5 }
 0x107   :  { %v81_v43 = vsel %vm80_vm4, %v477_v33, %v77_v40  ;;  %v84_v44 = vmul.f32 %v479_v39, %v83_v41  ;;  %v457_v41 = vld [vmem:[%s659_s5] sm:$0xff] }
 0x108   :  { %v92_v46 = vmul.f32 %v81_v43, %v58_v16  ;;  %360 = vmatpush.bf16.msra.mxu2 %v457_v41 }
 0x109   :  { %v85_v47 = vmul.f32 0.5, %v84_v44 }
 0x10a   :  { %v97_v48 = vmul.f32 %v470_v42, %v92_v46 }
 0x10b   :  { %v86_v49 = vsub.f32 1.5, %v85_v47 }
 0x10c   :  { %v102_v50 = vadd.f32 %v471_v45, %v97_v48 }
 0x10d   :  { %v87_v51 = vmul.f32 %v479_v39, %v86_v49 }
 0x10e   :  { %v104_v52 = vpack.c.bf16 %v102_v50, %v102_v50 }
 0x10f   :  { %v91_v53 = vsel %vm90_vm8, %v479_v39, %v87_v51 }
 0x110   :  { %107 = vst.msk [vmem:[#allocation2] sm:$0xf] %vm106_vm6, %v104_v52  ;;  %v93_v54 = vmul.f32 %v91_v53, %v59_v21 }
 0x112   :  { %v98_v55 = vmul.f32 %v470_v42, %v93_v54 }
 0x114   :  { %v103_v56 = vadd.f32 %v471_v45, %v98_v55 }
 0x116   :  { %v105_v57 = vpack.c.bf16 %v103_v56, %v103_v56 }
 0x118   :  { %108 = vst.msk [vmem:[#allocation2 + $0x4] sm:$0xf] %vm106_vm6, %v105_v57 }
 0x11f   :  { %v452_v58 = vld [vmem:[#allocation2] sm:$0xff] }
 0x120   :  { %408 = vmatmul.msk.bf16.vlgmr.msra.gmra.mxu0 %vm42_vm0, %v452_v58  ;;  %417 = vmatmul.msk.bf16.vlgmr.msra.gmra.mxu1 %vm42_vm0, %v452_v58 }
 0x19d   :  { %v191_v60 = vpop.f32.mrf.mxu1 }
 0x19e   :  { %v602_v61 = vadd.f32 %v473_v59, %v191_v60 }
 0x1a0   :  { %v605_v62 = vmul.f32 0.70710677, %v602_v61 }
 0x1a2   :  { %v200_v0 = vmul.f32 %v605_v62, %v605_v62 }
 0x1a4   :  { %v201_v1 = vmin.f32 %v200_v0, 16.0 }
 0x1a5   :  { %v193_v3 = vpop.f32.mrf.mxu1 }
 0x1a6   :  { %v202_v4 = vmul.f32 2.1237322e-06, %v201_v1  ;;  %v213_v5 = vmul.f32 3.8918573e-05, %v201_v1  ;;  %v615_v6 = vadd.f32 %v473_v59, %v193_v3 }
 0x1a8   :  { %v203_v7 = vadd.f32 0.00028619796, %v202_v4  ;;  %v214_v8 = vadd.f32 0.001143296, %v213_v5  ;;  %v621_v10 = vmul.f32 0.70710677, %v615_v6 }
 0x1aa   :  { %v204_v11 = vmul.f32 %v203_v7, %v201_v1  ;;  %v215_v12 = vmul.f32 %v214_v8, %v201_v1  ;;  %v240_v13 = vmul.f32 %v621_v10, %v621_v10  ;;  %v157_v7 = vpop.f32.mrf.mxu0 }
 0x1ac   :  { %v216_v14 = vadd.f32 0.014752088, %v215_v12  ;;  %v241_v16 = vmin.f32 %v240_v13, 16.0  ;;  %v205_v17 = vadd.f32 0.0036580483, %v204_v11 }
 0x1ae   :  { %v217_v18 = vmul.f32 %v216_v14, %v201_v1  ;;  %v242_v19 = vmul.f32 2.1237322e-06, %v241_v16  ;;  %v253_v20 = vmul.f32 3.8918573e-05, %v241_v16  ;;  %v206_v25 = vmul.f32 %v205_v17, %v201_v1 }
 0x1b0   :  { %v218_v21 = vadd.f32 0.112945676, %v217_v18  ;;  %v243_v23 = vadd.f32 0.00028619796, %v242_v19  ;;  %v254_v24 = vadd.f32 0.001143296, %v253_v20 }
 0x1b1   :  { %v207_v32 = vadd.f32 0.05243302, %v206_v25  ;;  %v472_v20 = vld [vmem:[%s657_s3] ss:$0 sm:$0xff]  ;;  %v197_v25 = vmul.f32 0.5, %v615_v6  ;;  %s511_s3 = smov [#allocation4]  }
 0x1b2   :  { %v219_v26 = vmul.f32 %v218_v21, %v201_v1  ;;  %v244_v27 = vmul.f32 %v243_v23, %v241_v16  ;;  %v255_v28 = vmul.f32 %v254_v24, %v241_v16  ;;  %v196_v21 = vmul.f32 0.5, %v602_v61  ;;  %v159_v23 = vpop.f32.mrf.mxu0  ;;  %s382_s16 = sshll.u32 %s511_s3, 4  ;;  %s383_s16 = int_to_ptr.vmem [resolvable:$true] %s382_s16 }
 0x1b3   :  { %v208_v39 = vmul.f32 %v207_v32, %v201_v1  ;;  %v287_v32 = vld [vmem:[#allocation3] sm:$0xff] }
 0x1b4   :  { %v220_v29 = vadd.f32 0.4994258, %v219_v26  ;;  %v256_v31 = vadd.f32 0.014752088, %v255_v28  ;;  %v245_v34 = vadd.f32 0.0036580483, %v244_v27  ;;  %v158_v27 = vadd.f32 %v472_v20, %v157_v7 }
 0x1b5   :  { %v209_v44 = vadd.f32 0.18741608, %v208_v39  ;;  %v160_v28 = vadd.f32 %v472_v20, %v159_v23 }
 0x1b6   :  { %v221_v33 = vmul.f32 %v220_v29, %v201_v1  ;;  %v257_v35 = vmul.f32 %v256_v31, %v241_v16  ;;  %v246_v40 = vmul.f32 %v245_v34, %v241_v16 }
 0x1b7   :  { %v210_v50 = vmul.f32 %v209_v44, %v201_v1 }
 0x1b8   :  { %v222_v36 = vadd.f32 1.0, %v221_v33  ;;  %v258_v38 = vadd.f32 0.112945676, %v257_v35  ;;  %v247_v45 = vadd.f32 0.05243302, %v246_v40  ;;  %v288_v35 = vld [vmem:[#allocation3 + $0x8] sm:$0xff] }
 0x1b9   :  { %v211_v56 = vadd.f32 1.1283791, %v210_v50 }
 0x1ba   :  { %480 = vrcp.f32 %v222_v36  ;;  %v259_v42 = vmul.f32 %v258_v38, %v241_v16  ;;  %v248_v51 = vmul.f32 %v247_v45, %v241_v16  ;;  %v234_v53 = vand.u32 2147483648, %v222_v36 }
 0x1bb   :  { %v232_v55 = vand.u32 2147483647, %v222_v36  ;;  %vm228_vm10 = vweird.f32 %v222_v36  ;;  %v212_v0 = vmul.f32 %v211_v56, %v605_v62 }
 0x1bc   :  { %v260_v43 = vadd.f32 0.4994258, %v259_v42  ;;  %v249_v57 = vadd.f32 0.18741608, %v248_v51  ;;  %v235_v59 = vor.u32 1.1754944e-38, %v234_v53 }
 0x1bd   :  { %vm233_vm12 = vcmp.eq.f32.partialorder %v232_v55, 8.507059e+37 }
 0x1be   :  { %v261_v46 = vmul.f32 %v260_v43, %v241_v16  ;;  %v250_v1 = vmul.f32 %v249_v57, %v241_v16 }
 0x1c0   :  { %v481_v47 = vpop.eup %480  ;;  %v262_v49 = vadd.f32 1.0, %v261_v46  ;;  %v251_v9 = vadd.f32 1.1283791, %v250_v1 }
 0x1c1   :  { %v224_v48 = vmul.f32 %v481_v47, %v222_v36  ;;  %vm229_vm9 = vweird.f32 %v481_v47 }
 0x1c2   :  { %482 = vrcp.f32 %v262_v49  ;;  %vm230_vm11 = vmor %vm228_vm10, %vm229_vm9  ;;  %v274_v8 = vand.u32 2147483648, %v262_v49  ;;  %v272_v12 = vand.u32 2147483647, %v262_v49  ;;  %vm268_vm14 = vweird.f32 %v262_v49 }
 0x1c3   :  { %v225_v52 = vsub.f32 1.0, %v224_v48  ;;  %v252_v17 = vmul.f32 %v251_v9, %v621_v10 }
 0x1c4   :  { %v275_v15 = vor.u32 1.1754944e-38, %v274_v8  ;;  %vm273_vm1 = vcmp.eq.f32.partialorder %v272_v12, 8.507059e+37 }
 0x1c5   :  { %v226_v54 = vmul.f32 %v481_v47, %v225_v52 }
 0x1c7   :  { %v227_v58 = vadd.f32 %v481_v47, %v226_v54 }
 0x1c8   :  { %v483_v60 = vpop.eup %482 }
 0x1c9   :  { %v231_v63 = vsel %vm230_vm11, %v481_v47, %v227_v58  ;;  %v264_v3 = vmul.f32 %v483_v60, %v262_v49  ;;  %vm269_vm13 = vweird.f32 %v483_v60 }
 0x1ca   :  { %v236_v2 = vsel %vm233_vm12, %v235_v59, %v231_v63  ;;  %vm270_vm15 = vmor %vm268_vm14, %vm269_vm13 }
 0x1cb   :  { %v237_v4 = vmul.f32 %v236_v2, %v212_v0  ;;  %v265_v5 = vsub.f32 1.0, %v264_v3 }
 0x1cd   :  { %v266_v11 = vmul.f32 %v483_v60, %v265_v5  ;;  %v418_v13 = vclamps-f32 %v237_v4, 1.0 }
 0x1cf   :  { %v267_v14 = vadd.f32 %v483_v60, %v266_v11  ;;  %v280_v16 = vadd.f32 1.0, %v418_v13 }
 0x1d1   :  { %v271_v18 = vsel %vm270_vm15, %v483_v60, %v267_v14  ;;  %v282_v24 = vmul.f32 %v280_v16, %v196_v21 }
 0x1d2   :  { %v276_v62 = vsel %vm273_vm1, %v275_v15, %v271_v18 }
 0x1d3   :  { %v277_v19 = vmul.f32 %v276_v62, %v252_v17  ;;  %v284_v29 = vmul.f32 %v282_v24, %v158_v27 }
 0x1d5   :  { %v419_v22 = vclamps-f32 %v277_v19, 1.0 }
 0x1d7   :  { %v281_v26 = vadd.f32 1.0, %v419_v22 }
 0x1d9   :  { %v283_v10 = vmul.f32 %v281_v26, %v197_v25 }
 0x1db   :  { %v285_v30 = vmul.f32 %v283_v10, %v160_v28 }
 0x1dd   :  { %v286_v31 = vpack.c.bf16 %v285_v30, %v284_v29 }
 0x1df   :  { %361 = vmatmul.bf16.vlgmr.msra.gmra.mxu2 %v286_v31 }
 0x262   :  { %v362_v33 = vpop.f32.mrf.mxu2 }
 0x263   :  { %v367_v34 = vadd.f32 %v362_v33, %v287_v32 }
 0x265   :  { %369 = vst.msk [vmem:[#allocation3] sm:$0xff] %vm42_vm0, %v367_v34 }
 0x26a   :  { %v364_v61 = vpop.f32.mrf.mxu2 }
 0x26b   :  { %v368_v36 = vadd.f32 %v364_v61, %v288_v35 }
 0x26c   :  { %v374_v37 = vld [vmem:[#allocation3] sm:$0xff] }
 0x26d   :  { %370 = vst.msk [vmem:[#allocation3 + $0x8] sm:$0xff] %vm42_vm0, %v368_v36 }
 0x26e   :  { %376 = vst.msk [vmem:[#allocation4] sm:$0xff] %vm42_vm0, %v374_v37 }
 0x274   :  { %v375_v6 = vld [vmem:[#allocation3 + $0x8] sm:$0xff] }
 0x275   :  { %377 = vst.msk [vmem:[#allocation4 + $0x8] sm:$0xff] %vm42_vm0, %v375_v6 }
 0x276   :  { %390 = dma.vmem_to_hbm [thread:$0]  %s383_s16, 256, %s385_s19, [#allocation5], %s512_s20, %s512_s20, %s513_s21  }
 0x277   :  { %508 = dma.done.wait [#allocation5], 256  }
 0x278   :  { %509 = vsyncadd [#allocation5], 4294967040 }
 0x279   :  { %395 = vsyncpa [#allocation5], 1 }

// kernel: basic_transformer_block_fwd.4
= control target key start
LH: loop header
LB: loop body
LE: loop exit
PB: predicated region body
PF: predicated region fallthrough
CT: control target
= control target key end

     0   :  { %s1181_s30 = smov 0   ;;  %s1183_s10 = smov 0   ;;  %s1308_s0 = inlined_call_operand.vmem [shape: f32[2,8,32], index: 0, kind: input, shape index: {}]   ;;  %s1309_s1 = inlined_call_operand.vmem [shape: f32[2,12,48], index: 1, kind: input, shape index: {}]   ;;  %s1310_s2 = inlined_call_operand.vmem [shape: bf16[4,32,8], index: 2, kind: input, shape index: {}]   ;;  %s1311_s3 = inlined_call_operand.vmem [shape: bf16[4,48,8], index: 3, kind: input, shape index: {}]   ;;  %s1312_s4 = inlined_call_operand.vmem [shape: bf16[4,48,8], index: 4, kind: input, shape index: {}]   ;;  %s1313_s5 = inlined_call_operand.vmem [shape: bf16[4,8,32], index: 5, kind: input, shape index: {}]   ;;  %s1314_s6 = inlined_call_operand.vmem [shape: f32[1,32], index: 6, kind: input, shape index: {}]   ;;  %s1315_s7 = inlined_call_operand.vmem [shape: f32[1,32], index: 7, kind: input, shape index: {}]   ;;  %s1316_s8 = inlined_call_operand.vmem [shape: f32[1,32], index: 8, kind: input, shape index: {}]   ;;  %s1317_s9 = inlined_call_operand.vmem [shape: f32[2,8,32], index: 9, kind: output, shape index: {}]  }
   0x1   :  { %1319 = sst [smem:[#allocation11_spill]] %s1308_s0  ;;  %s1185_s11 = smov 0  }
   0x2   :  { %1320 = sst [smem:[#allocation12_spill]] %s1309_s1  ;;  %s1187_s12 = smov 0  }
   0x3   :  { %s1189_s13 = smov 0  }
   0x4 LB: > { %1321 = sst [smem:[#allocation8_spill]] %s1121_s12  ;;  %s37_s14 = sadd.s32 1, %s1117_s11  ;;  %s1125_s13 = sphi %s1189_s13, %s19_s13   ;;  %s1121_s12 = sphi %s1187_s12, %s1328_s12   ;;  %s1117_s11 = sphi %s1185_s11, %s1330_s11   ;;  %s1113_s10 = sphi %s1183_s10, %s1326_s10   ;;  %s1109_s30 = sphi %s1181_s30, %s1329_s30  }
   0x5   : > { %s45_s15 = sadd.s32 1, %s1121_s12  ;;  %p39_p0 = scmp.ge.s32.totalorder %s37_s14, 4 }
   0x6   : > { %p962_p1 = scmp.ge.s32.totalorder %s1125_s13, 1  ;;  %p375_p2 = scmp.lt.s32.totalorder %s1125_s13, 9 }
   0x7   : > { %s1332_s14 = smov (%p39_p0, %s37_s14), 0  ;;  %s1334_s15 = smov (!%p39_p0, %s45_s15), %s1121_s12 }
   0x8   : > { %1322 = sst [smem:[#allocation9_spill]] %s1332_s14  ;;  %p376_p3 = pnand %p962_p1, %p375_p2 }
   0x9   : > { %p47_p4 = scmp.ge.s32.totalorder %s1334_s15, 2  ;;  %p443_p5 = scmp.lt.s32.totalorder (!%p376_p3), %s1113_s10, 1 }
   0xa   : > { %379 = sbr.rel (%p376_p3) target bundleno = 1231 (0x4cf), region = 56  ;;  %p460_p6 = scmp.lt.s32.totalorder (!%p376_p3), %s1109_s30, 3 }
   0xb   : > { %s1336_s15 = smov (%p47_p4, %s1334_s15), 0  ;;  %p487_p7 = scmp.eq.s32.totalorder (!%p376_p3), %s1109_s30, 0 }
   0xc   : > { %1323 = sst [smem:[#allocation10_spill]] %s1336_s15 }
   0xd   : > { %s1324_s0 = sld [smem:[#allocation11_spill]] (!%p376_p3) }
   0xe   : > { %s1325_s1 = sld [smem:[#allocation12_spill]] (!%p376_p3) }
   0xf   : > { %s1338_s10 = smov (!%p443_p5, %s1113_s10), 1  ;;  %vm496_vm0 = vcmask (%p487_p7), 261120   ;;  %v1071_v1 = vld [vmem:[%s1314_s6] ss:$0 sm:$0xff] (%p487_p7)  ;;  %v1127_v4 = vmov (%p487_p7), 32.0   ;;  %vm535_vm5 = vcmask (%p487_p7), 257024  }
  0x10   : > { %s461_s16 = scalar_select %p460_p6, %s1109_s30, 3  ;;  %1074 = vrcp.f32 (%p487_p7), %v1127_v4  ;;  %v1072_v25 = vld [vmem:[%s1315_s7] ss:$0 sm:$0xff] (%p487_p7) }
  0x11   : > { %s963_s17 = sshll.u32 %s1338_s10, 3  ;;  %s1014_s18 = sshll.u32 %s1338_s10, 4  ;;  %v1073_v27 = vld [vmem:[%s1316_s8] ss:$0 sm:$0xff] (%p487_p7) }
  0x12   : > { %s1015_s25 = sshll.u32 %s461_s16, 4  ;;  %s1026_s26 = smul.u32 24, %s461_s16 }
  0x13   : > { %s449_s21 = scalar_lea.vmem %s1324_s0, %s963_s17  ;;  %s1227_s29 = scalar_lea.vmem %s1310_s2, %s1015_s25 }
  0x14   : > { %s1222_s24 = scalar_lea.vmem %s1325_s1, %s1014_s18  ;;  %s970_s15 = sshll.u32 %s461_s16, 2  ;;  %v493_v0 = vld [vmem:[%s449_s21] sm:$0xff] (%p487_p7) }
  0x15   : > { %s1232_s10 = scalar_lea.vmem %s1311_s3, %s1026_s26  ;;  %s1237_s0 = scalar_lea.vmem %s1312_s4, %s1026_s26  ;;  %v497_v2 = vsel (%p487_p7), %vm496_vm0, %v493_v0, 0.0  ;;  %v541_v3 = vadd.f32 (%p487_p7), %v1071_v1, %v493_v0 }
  0x16   : > { %s1242_s23 = scalar_lea.vmem %s1313_s5, %s970_s15  ;;  %s1247_s25 = scalar_lea.vmem %s1317_s9, %s963_s17  ;;  %498 = vadd.xlane.f32.xlu0 (%p487_p7), %v497_v2  ;;  %v1075_v5 = vpop.eup (%p487_p7), %1074 }
  0x17   : > { %492 = sbr.rel (!%p487_p7) target bundleno = 292 (0x124), region = 60  ;;  %542 = vst.msk [vmem:[#allocation7] sm:$0xff] (%p487_p7), %vm496_vm0, %v541_v3  ;;  %v501_v6 = vmul.f32 (%p487_p7), 32.0, %v1075_v5  ;;  %vm505_vm1 = vweird.f32 (%p487_p7), %v1075_v5 }
  0x19   : > { %v502_v7 = vsub.f32 (%p487_p7), 1.0, %v501_v6 }
  0x1b   : > { %v503_v8 = vmul.f32 (%p487_p7), %v1075_v5, %v502_v7 }
  0x1d   : > { %v504_v9 = vadd.f32 %v1075_v5, %v503_v8 }
  0x1f   : > { %v506_v10 = vsel %vm505_vm1, %v1075_v5, %v504_v9 }
  0x89   : > { %v499_v11 = vpop.xlane.xlu0 %498 }
  0x8a   : > { %v507_v12 = vmul.f32 %v506_v10, %v499_v11 }
  0x8c   : > { %v508_v13 = vsub.f32 %v493_v0, %v507_v12 }
  0x8e   : > { %v509_v14 = vmul.f32 %v508_v13, %v508_v13 }
  0x90   : > { %v510_v15 = vsel %vm496_vm0, %v509_v14, 0.0 }
  0x91   : > { %511 = vadd.xlane.f32.xlu0 %v510_v15 }
 0x104   : > { %v512_v16 = vpop.xlane.xlu0 %511 }
 0x105   : > { %v513_v17 = vmul.f32 %v512_v16, %v506_v10 }
 0x107   : > { %v514_v18 = vadd.f32 1e-05, %v513_v17 }
 0x109   : > { %1076 = vrsqrt.f32 %v514_v18  ;;  %vm521_vm3 = vweird.f32 %v514_v18 }
 0x10f   : > { %v1077_v19 = vpop.eup %1076 }
 0x110   : > { %v516_v20 = vmul.f32 %v1077_v19, %v514_v18  ;;  %vm522_vm2 = vweird.f32 %v1077_v19 }
 0x111   : > { %vm523_vm4 = vmor %vm521_vm3, %vm522_vm2 }
 0x112   : > { %v517_v21 = vmul.f32 %v1077_v19, %v516_v20 }
 0x114   : > { %v518_v22 = vmul.f32 0.5, %v517_v21 }
 0x116   : > { %v519_v23 = vsub.f32 1.5, %v518_v22 }
 0x118   : > { %v520_v24 = vmul.f32 %v1077_v19, %v519_v23 }
 0x11a   : > { %v524_v26 = vsel %vm523_vm4, %v1077_v19, %v520_v24 }
 0x11b   : > { %v525_v28 = vmul.f32 %v524_v26, %v508_v13 }
 0x11d   : > { %v529_v29 = vmul.f32 %v1072_v25, %v525_v28 }
 0x11f   : > { %v533_v30 = vadd.f32 %v1073_v27, %v529_v29 }
 0x121   : > { %v534_v31 = vpack.c.bf16 %v533_v30, %v533_v30 }
 0x123   : > { %536 = vst.msk [vmem:[#allocation2] sm:$0xf] %vm535_vm5, %v534_v31 }
 0x124 PF: > { %v1021_v32 = vld [vmem:[%s1232_s10 + $0x10] sm:$0xff]  ;;  %v1018_v33 = vld [vmem:[%s1227_s29 + $0x8] sm:$0xff]  ;;  %v1017_v35 = vld [vmem:[%s1227_s29] sm:$0xff]  ;;  %vm563_vm6 = vcmask 261120   ;;  %vm615_vm7 = vcmask 392192   ;;  %vm586_vm8 = vcmask 64512  }
 0x125   : > { %624 = vmatpush.bf16.msra.mxu1 %v1021_v32  ;;  %573 = vmatpush.bf16.msra.mxu0 %v1018_v33  ;;  %v1020_v34 = vld [vmem:[%s1232_s10 + $0x8] sm:$0xff]  ;;  %v1019_v36 = vld [vmem:[%s1232_s10] sm:$0xff]  ;;  %v1128_v41 = vmov 0.0   ;;  %vm581_vm9 = vcmask 60416   ;;  %v1024_v50 = vld [vmem:[%s1237_s0 + $0x10] sm:$0xff]  ;;  %vm583_vm10 = vcmask 7168  }
 0x126   : > { %v588_v38 = vld [vmem:[%s1222_s24] sm:$0xff]  ;;  %v589_v39 = vld [vmem:[%s1222_s24 + $0x8] sm:$0xf]  ;;  %587 = vst.msk [vmem:[#allocation6] sm:$0xff] %vm586_vm8, %v1128_v41  ;;  %v1129_v51 = vmov -inf   ;;  %663 = vmatpush.bf16.msra.mxu2 %v1024_v50  ;;  %vm695_vm11 = vcmask 97280  }
 0x127   : > { %v590_v40 = vpack.c.bf16 %v589_v39, %v588_v38  ;;  %584 = vst.msk [vmem:[#allocation4] sm:$0xff] %vm583_vm10, %v1129_v51  ;;  %v1023_v52 = vld [vmem:[%s1237_s0 + $0x8] sm:$0xff]  ;;  %v1022_v53 = vld [vmem:[%s1237_s0] sm:$0xff]  ;;  %v1130_v57 = vmov 0   ;;  %vm730_vm12 = vcmask 1045504   ;;  %vm781_vm13 = vcmask 1043456  }
 0x128   : > { %585 = vst.msk [vmem:[#allocation5] sm:$0xff] %vm583_vm10, %v1128_v41  ;;  %1078 = vset.pattern.permute.xlu0 %v1130_v57  ;;  %1080 = vset.pattern.permute.xlu2 %v1130_v57  ;;  %v777_v21 = vld [vmem:[%s1242_s23] sm:$0xf]  ;;  %p801_p8 = scmp.eq.s32.totalorder %s1109_s30, 3 }
 0x129   : > { %625 = vmatpush.bf16.msra.mxu1 %v1020_v34  ;;  %574 = vmatpush.bf16.msra.mxu0 %v1017_v35  ;;  %v783_v22 = vsel %vm781_vm13, %v777_v21, 0 }
 0x12a   : > { %v546_v37 = vld [vmem:[#allocation2] sm:$0xf]  ;;  %664 = vmatpush.bf16.msra.mxu2 %v1023_v52  ;;  %1079 = vset.pattern.permute.xlu1 %v1130_v57 }
 0x12c   : > { %981 = vmatmul.msk.bf16.vlgmr.msra.gmra.mxu0 %vm563_vm6, %v546_v37  ;;  %v776_v37 = vld [vmem:[#allocation7] sm:$0xff] }
 0x12d   : > { %626 = vmatpush.bf16.msra.mxu1 %v1019_v36  ;;  %v719_v14 = vld [vmem:[#allocation6] sm:$0xff] }
 0x12e   : > { %665 = vmatpush.bf16.msra.mxu2 %v1022_v53  ;;  %v694_v58 = vld [vmem:[#allocation4] sm:$0xff] }
 0x12f   : > { %v711_v10 = vld [vmem:[#allocation5] sm:$0xff] }
 0x130   : > { %994 = vmatmul.msk.bf16.vlgmr.msra.gmra.mxu1 %vm615_vm7, %v590_v40 }
 0x131   : > { %1007 = vmatmul.msk.bf16.vlgmr.msra.gmra.mxu2 %vm615_vm7, %v590_v40 }
 0x1a9   : > { %v576_v42 = vpop.f32.mrf.mxu0 }
 0x1aa   : > { %v580_v43 = vpack.c.bf16 %v576_v42, %v576_v42 }
 0x1ac   : > { %582 = vst.msk [vmem:[#allocation3] sm:$0xf] %vm581_vm9, %v580_v43 }
 0x1ad   : > { %v628_v44 = vpop.f32.mrf.mxu1 }
 0x1b1   : > { %v578_v45 = vpop.f32.mrf.mxu0 }
 0x1b3   : > { %v673_v49 = vld [vmem:[#allocation3] sm:$0xf] }
 0x1b4   : > { %v667_v0 = vpop.f32.mrf.mxu2 }
 0x1b5   : > { %v630_v46 = vpop.f32.mrf.mxu1 }
 0x1b6   : > { %v633_v47 = vpack.c.bf16 %v630_v46, %v628_v44 }
 0x1b8   : > { %v679_v48 = vsel %vm586_vm8, %v633_v47, 0 }
 0x1b9   : > { %688 = vmatpush.bf16.xpose.msra.mxu3 %v679_v48 }
 0x1bc   : > { %v669_v1 = vpop.f32.mrf.mxu2 }
 0x1bd   : > { %v672_v2 = vpack.c.bf16 %v669_v1, %v667_v0 }
 0x1bf   : > { %v732_v3 = vsel %vm730_vm12, %v672_v2, 0 }
 0x1c0   : > { %1008 = vmatmul.msk.bf16.vlgmr.msra.gmra.mxu3 %vm586_vm8, %v673_v49  ;;  %741 = vmatpush.bf16.msrb.mxu0 %v732_v3 }
 0x1c1   : > { %792 = vmatpush.bf16.msrb.mxu3 %v783_v22 }
 0x243   : > { %v690_v54 = vpop.f32.mrf.mxu3 }
 0x244   : > { %v696_v55 = vsel %vm695_vm11, %v690_v54, -inf }
 0x245   : > { %697 = vmax.xlane.f32.xlu0 %v696_v55 }
 0x24b   : > { %v692_v56 = vpop.f32.mrf.mxu3 }
 0x2b8   : > { %v698_v59 = vpop.xlane.xlu0 %697 }
 0x2b9   : > { %v699_v60 = vmax.f32 %v694_v58, %v698_v59 }
 0x2bb   : > { %v700_v61 = vsub.f32 %v694_v58, %v699_v60  ;;  %749 = vst.msk [vmem:[#allocation4] sm:$0xff] %vm583_vm10, %v699_v60  ;;  %705 = vperm.xlu0 %1078, %v699_v60  }
 0x2bd   : > { %v701_v62 = vmul.f32 1.442695, %v700_v61 }
 0x2bf   : > { %1081 = vpow2.f32 %v701_v62 }
 0x2c5   : > { %v1082_v63 = vpop.eup %1081 }
 0x2c6   : > { %722 = vperm.xlu2 %1080, %v1082_v63   ;;  %v712_v11 = vmul.f32 %v1082_v63, %v711_v10 }
 0x320   : > { %v723_v15 = vpop.permute.xlu2 %722 }
 0x321   : > { %v725_v16 = vmul.f32 %v723_v15, %v719_v14 }
 0x32d   : > { %v706_v4 = vpop.permute.xlu0 %705 }
 0x32e   : > { %v708_v5 = vsub.f32 %v690_v54, %v706_v4 }
 0x330   : > { %v709_v6 = vmul.f32 1.442695, %v708_v5 }
 0x332   : > { %1083 = vpow2.f32 %v709_v6 }
 0x338   : > { %v1084_v7 = vpop.eup %1083 }
 0x339   : > { %v713_v8 = vsel %vm695_vm11, %v1084_v7, 0.0  ;;  %v726_v9 = vpack.c.bf16 %v1084_v7, %v1084_v7 }
 0x33a   : > { %714 = vadd.xlane.f32.xlu1 %v713_v8 }
 0x33b   : > { %1009 = vmatmul.msk.bf16.vlgmr.msrb.gmra.mxu0 %vm695_vm11, %v726_v9 }
 0x3ad   : > { %v715_v12 = vpop.xlane.xlu1 %714 }
 0x3ae   : > { %v716_v13 = vadd.f32 %v715_v12, %v712_v11 }
 0x3b0   : > { %718 = vst.msk [vmem:[#allocation5] sm:$0xff] %vm583_vm10, %v716_v13 }
 0x3b7   : > { %v754_v17 = vld [vmem:[#allocation5] sm:$0xff] }
 0x3b8   : > { %757 = vperm.xlu1 %1079, %v754_v17   ;;  %v743_v18 = vpop.f32.mrf.mxu0 }
 0x3b9   : > { %v747_v19 = vadd.f32 %v743_v18, %v725_v16 }
 0x3bb   : > { %748 = vst.msk [vmem:[#allocation6] sm:$0xff] %vm586_vm8, %v747_v19 }
 0x3c0   : > { %v745_v20 = vpop.f32.mrf.mxu0 }
 0x3c2   : > { %v753_v34 = vld [vmem:[#allocation6] sm:$0xff] }
 0x42a   : > { %v758_v23 = vpop.permute.xlu1 %757 }
 0x42b   : > { %1085 = vrcp.f32 %v758_v23  ;;  %v771_v27 = vand.u32 2147483648, %v758_v23  ;;  %v769_v29 = vand.u32 2147483647, %v758_v23  ;;  %vm765_vm15 = vweird.f32 %v758_v23 }
 0x42d   : > { %v772_v31 = vor.u32 1.1754944e-38, %v771_v27  ;;  %vm770_vm1 = vcmp.eq.f32.partialorder %v769_v29, 8.507059e+37 }
 0x431   : > { %v1086_v24 = vpop.eup %1085 }
 0x432   : > { %v761_v25 = vmul.f32 %v1086_v24, %v758_v23  ;;  %vm766_vm14 = vweird.f32 %v1086_v24 }
 0x433   : > { %vm767_vm0 = vmor %vm765_vm15, %vm766_vm14 }
 0x434   : > { %v762_v26 = vsub.f32 1.0, %v761_v25 }
 0x436   : > { %v763_v28 = vmul.f32 %v1086_v24, %v762_v26 }
 0x438   : > { %v764_v30 = vadd.f32 %v1086_v24, %v763_v28 }
 0x43a   : > { %v768_v32 = vsel %vm767_vm0, %v1086_v24, %v764_v30 }
 0x43b   : > { %v773_v33 = vsel %vm770_vm1, %v772_v31, %v768_v32 }
 0x43c   : > { %v774_v35 = vmul.f32 %v773_v33, %v753_v34 }
 0x43e   : > { %v775_v36 = vpack.c.bf16 %v774_v35, %v774_v35 }
 0x440   : > { %1010 = vmatmul.msk.bf16.vlgmr.msrb.gmra.mxu3 %vm586_vm8, %v775_v36 }
 0x4c3   : > { %v794_v38 = vpop.f32.mrf.mxu3 }
 0x4c4   : > { %v798_v39 = vadd.f32 %v794_v38, %v776_v37 }
 0x4c6   : > { %800 = vst.msk [vmem:[#allocation7] sm:$0xff] %vm563_vm6, %v798_v39 }
 0x4c7   : > { %805 = sbr.rel (!%p801_p8) target bundleno = 1231 (0x4cf), region = 72 }
 0x4cb   : > { %v796_v40 = vpop.f32.mrf.mxu3 }
 0x4cd   : > { %v806_v41 = vld [vmem:[#allocation7] sm:$0xff] }
 0x4ce   : > { %808 = vst.msk [vmem:[%s1247_s25] sm:$0xff] %vm563_vm6, %v806_v41 }
 0x4cf PF: > { %s19_s13 = sadd.s32 1, %s1125_s13   ;;  %s1326_s10 = sld [smem:[#allocation8_spill]] }
 0x4d0   : > { %p16_p9 = scmp.ge.s32.totalorder %s19_s13, 10   ;;  %s1327_s0 = sld [smem:[#allocation9_spill]] }
 0x4d1   : > { %s1328_s12 = sld [smem:[#allocation10_spill]]  ;;  %s1329_s30 = smov %s1117_s11 }
 0x4d2   :  { %18 = sbr.rel (!%p16_p9) target bundleno = 4 (0x4), region = 117 }
 0x4d6   : > { %s1330_s11 = smov %s1327_s0 }

</bundles_post_ra>
